<compile_context>
chip_gen: v7x
topology: tpu7x:2x2x1
jax: 0.10.0
libtpu: 0.0.40
codegen_flags: <defaults>
</compile_context>

<pallas_src>
import functools

import jax
import jax.numpy as jnp
from jax import lax
from jax.experimental import pallas as pl
from jax.experimental.pallas import tpu as pltpu


def _round_up(n, m):
    return ((n + m - 1) // m) * m


# ----------------------------------------------------------------------------
# Pallas kernel: one grid step == one chunk of TC time steps
# ----------------------------------------------------------------------------
def bayesian_lstm_kernel(
    x_ref,       # (TC, Bp, Ip)    compute dtype
    eps_ref,     # (TC, Bp, Op)    f32
    wx_ref,      # (Ip, 4*Hp)      compute dtype, gate column order [i, f, o, g]
    wh_ref,      # (Hp, 4*Hp)      compute dtype
    b4_ref,      # (1, 4*Hp)       f32
    whead_ref,   # (Hp, 2*Op)      compute dtype, [mu | logvar]
    bhead_ref,   # (1, 2*Op)       f32
    out_ref,     # (TC, Bp, Op)    f32
    h_ref,       # (Bp, Hp)        f32 scratch (carried across chunks)
    c_ref,       # (Bp, Hp)        f32 scratch (carried across chunks)
    gx_ref,      # (TC, Bp, 4*Hp)  f32 scratch: precomputed x-projection for the chunk
    hseq_ref,    # (TC, Bp, Hp)    f32 scratch: per-step hidden states for the chunk
    *,
    unroll,
):
    @pl.when(pl.program_id(0) == 0)
    def _init():
        h_ref[...] = jnp.zeros_like(h_ref)
        c_ref[...] = jnp.zeros_like(c_ref)

    tc, bp, _ = x_ref.shape
    hp = h_ref.shape[-1]
    op = out_ref.shape[-1]
    cdtype = wx_ref.dtype

    # Constant operands (already VMEM-resident): load once per chunk.
    wx = wx_ref[...]
    wh = wh_ref[...]
    b4 = b4_ref[...]
    whead = whead_ref[...]
    bhead = bhead_ref[...]

    # ---- 1) Batched input projection for the whole chunk (one big MXU matmul). ----
    # (TC, Bp, Ip) -> (TC*Bp, Ip) is a layout no-op (Bp multiple of 8, Ip multiple of 128).
    x_flat = x_ref[...].reshape(tc * bp, -1)
    gx = jnp.dot(x_flat, wx, preferred_element_type=jnp.float32) + b4
    gx_ref[...] = gx.reshape(tc, bp, 4 * hp)

    # ---- 2) Recurrent loop: only h @ Wh + elementwise gate math on the serial path. ----
    def step(t, carry):
        h, c = carry                                            # f32 (Bp, Hp)
        gates = gx_ref[t] + jnp.dot(
            h.astype(cdtype), wh, preferred_element_type=jnp.float32)

        # One sigmoid over the contiguous [i, f, o] block, one tanh for g.
        sig = jax.nn.sigmoid(gates[:, : 3 * hp])
        i_g = sig[:, 0:hp]
        f_g = sig[:, hp:2 * hp]
        o_g = sig[:, 2 * hp:3 * hp]
        g_g = jnp.tanh(gates[:, 3 * hp:])

        c_new = f_g * c + i_g * g_g
        h_new = o_g * jnp.tanh(c_new)
        hseq_ref[t] = h_new                                     # off the critical path
        return h_new, c_new

    h_fin, c_fin = lax.fori_loop(0, tc, step, (h_ref[...], c_ref[...]), unroll=unroll)
    h_ref[...] = h_fin
    c_ref[...] = c_fin

    # ---- 3) Batched heads + reparameterization for the whole chunk. ----
    h_flat = hseq_ref[...].reshape(tc * bp, hp)
    heads = jnp.dot(h_flat.astype(cdtype), whead,
                    preferred_element_type=jnp.float32) + bhead
    mu = heads[:, :op]
    logvar = heads[:, op:]
    eps_flat = eps_ref[...].reshape(tc * bp, op)
    out = mu + eps_flat * jnp.exp(0.5 * logvar)
    out_ref[...] = out.reshape(tc, bp, op)                      # lane-dense chunk store


# ----------------------------------------------------------------------------
# Wrapper: pad / fuse weights, build specs, call the kernel
# ----------------------------------------------------------------------------
def bayesian_lstm_forward(x, eps, params, *, time_chunk=None,
                          compute_dtype=jnp.float32):
    """x: (T, B, I) f32, eps: (T, B, O) f32. Returns (T, B, O) f32."""
    T, B, I = x.shape
    O = eps.shape[-1]
    H = params["w_hh"].shape[1]          # w_hh is (4H, H)

    # Padded (TPU-friendly) sizes: sublane multiple of 8, lane multiple of 128.
    Bp = _round_up(max(B, 8), 8)
    Ip = _round_up(I, 128)
    Hp = _round_up(H, 128)
    Op = _round_up(O, 128)

    TC = int(time_chunk) if time_chunk is not None else min(T, 32)
    Tp = _round_up(T, TC)
    n_chunks = Tp // TC

    w_ih, w_hh = params["w_ih"], params["w_hh"]      # (4H, I), (4H, H)
    b = params["b_ih"] + params["b_hh"]              # (4H,)

    # PyTorch gate row-block order is (i, f, g, o); fused column order is (i, f, o, g)
    # so the sigmoid gates are contiguous.
    order = (0, 1, 3, 2)

    def fuse_gate_w(w, d, dp):
        out = jnp.zeros((dp, 4 * Hp), jnp.float32)
        for slot, g in enumerate(order):
            out = out.at[:d, slot * Hp:slot * Hp + H].set(w[g * H:(g + 1) * H, :].T)
        return out.astype(compute_dtype)

    Wx = fuse_gate_w(w_ih, I, Ip)                    # (Ip, 4Hp)
    Wh = fuse_gate_w(w_hh, H, Hp)                    # (Hp, 4Hp)

    b4 = jnp.zeros((1, 4 * Hp), jnp.float32)
    for slot, g in enumerate(order):
        b4 = b4.at[0, slot * Hp:slot * Hp + H].set(b[g * H:(g + 1) * H])

    Whead = jnp.zeros((Hp, 2 * Op), jnp.float32)
    Whead = Whead.at[:H, :O].set(params["w_mu"].T)
    Whead = Whead.at[:H, Op:Op + O].set(params["w_logvar"].T)
    Whead = Whead.astype(compute_dtype)

    bhead = jnp.zeros((1, 2 * Op), jnp.float32)
    bhead = bhead.at[0, :O].set(params["b_mu"])
    bhead = bhead.at[0, Op:Op + O].set(params["b_logvar"])

    # Zero-pad activations (zero pads are exact: padded gate lanes stay at h=c=0).
    xp = jnp.zeros((Tp, Bp, Ip), compute_dtype).at[:T, :B, :I].set(
        x.astype(compute_dtype))
    epsp = jnp.zeros((Tp, Bp, Op), jnp.float32).at[:T, :B, :O].set(eps)

    def vmem_resident():
        # Whole-array, VMEM-resident, un-pipelined constant operand.
        return pl.BlockSpec(memory_space=pltpu.MemorySpace.VMEM)

    kernel = functools.partial(bayesian_lstm_kernel, unroll=bool(TC <= 8))

    out = pl.pallas_call(
        kernel,
        out_shape=jax.ShapeDtypeStruct((Tp, Bp, Op), jnp.float32),
        grid_spec=pltpu.PrefetchScalarGridSpec(
            num_scalar_prefetch=0,
            grid=(n_chunks,),
            in_specs=[
                pl.BlockSpec((TC, Bp, Ip), lambda c: (c, 0, 0)),   # x chunk
                pl.BlockSpec((TC, Bp, Op), lambda c: (c, 0, 0)),   # eps chunk
                vmem_resident(),   # Wx
                vmem_resident(),   # Wh
                vmem_resident(),   # b4
                vmem_resident(),   # Whead
                vmem_resident(),   # bhead
            ],
            out_specs=pl.BlockSpec((TC, Bp, Op), lambda c: (c, 0, 0)),
            scratch_shapes=[
                pltpu.VMEM((Bp, Hp), jnp.float32),         # h  (carried across chunks)
                pltpu.VMEM((Bp, Hp), jnp.float32),         # c  (carried across chunks)
                pltpu.VMEM((TC, Bp, 4 * Hp), jnp.float32), # gx  (per-chunk x projection)
                pltpu.VMEM((TC, Bp, Hp), jnp.float32),     # h_seq (per-chunk hidden states)
            ],
        ),
        compiler_params=pltpu.CompilerParams(
            dimension_semantics=("arbitrary",),          # time recurrence is sequential
            vmem_limit_bytes=32 * 1024 * 1024,
        ),
    )(xp, epsp, Wx, Wh, b4, Whead, bhead)

    return out[:T, :B, :O]


# ----------------------------------------------------------------------------
# Pure-JAX reference (lax.scan LSTM) for correctness check
# ----------------------------------------------------------------------------
def reference_forward(x, eps, params):
    H = params["w_hh"].shape[1]
    w_ih, w_hh = params["w_ih"], params["w_hh"]
    b = params["b_ih"] + params["b_hh"]

    def step(carry, x_t):
        h, c = carry
        gates = x_t @ w_ih.T + h @ w_hh.T + b
        i = jax.nn.sigmoid(gates[:, 0:H])
        f = jax.nn.sigmoid(gates[:, H:2 * H])
        g = jnp.tanh(gates[:, 2 * H:3 * H])
        o = jax.nn.sigmoid(gates[:, 3 * H:4 * H])
        c_new = f * c + i * g
        h_new = o * jnp.tanh(c_new)
        return (h_new, c_new), h_new

    B = x.shape[1]
    h0 = jnp.zeros((B, H), jnp.float32)
    c0 = jnp.zeros((B, H), jnp.float32)
    _, hs = lax.scan(step, (h0, c0), x)                    # (T, B, H)
    mu = hs @ params["w_mu"].T + params["b_mu"]
    logvar = hs @ params["w_logvar"].T + params["b_logvar"]
    std = jnp.exp(0.5 * logvar)
    return mu + eps * std


# ----------------------------------------------------------------------------
# Deterministic parameter init (PyTorch-style uniform(-1/sqrt(H), 1/sqrt(H)))
# ----------------------------------------------------------------------------
def init_params(key, input_size, hidden_size, output_size):
    ks = jax.random.split(key, 8)
    bound = 1.0 / jnp.sqrt(hidden_size)

    def u(k, shape):
        return jax.random.uniform(k, shape, jnp.float32, -bound, bound)

    return {
        "w_ih": u(ks[0], (4 * hidden_size, input_size)),
        "w_hh": u(ks[1], (4 * hidden_size, hidden_size)),
        "b_ih": u(ks[2], (4 * hidden_size,)),
        "b_hh": u(ks[3], (4 * hidden_size,)),
        "w_mu": u(ks[4], (output_size, hidden_size)),
        "b_mu": u(ks[5], (output_size,)),
        "w_logvar": u(ks[6], (output_size, hidden_size)),
        "b_logvar": u(ks[7], (output_size,)),
    }


if __name__ == "__main__":
    T, B = 8, 2
    INPUT, HIDDEN, OUTPUT = 5, 25, 5

    key = jax.random.PRNGKey(0)
    k_params, k_x, k_eps = jax.random.split(key, 3)

    params = init_params(k_params, INPUT, HIDDEN, OUTPUT)
    x = jax.random.normal(k_x, (T, B, INPUT), jnp.float32)
    # torch.randn_like(std) equivalent: standard-normal noise, same shape as output
    eps = jax.random.normal(k_eps, (T, B, OUTPUT), jnp.float32)

    ref = jax.block_until_ready(reference_forward(x, eps, params))

    # f32 compute, single time chunk (grid of 1)
    out = jax.block_until_ready(bayesian_lstm_forward(x, eps, params))
    assert out.shape == (T, B, OUTPUT)
    assert jnp.allclose(out, ref, atol=5e-4, rtol=5e-4), "f32 kernel mismatch vs reference"

    # f32 compute, multi-chunk grid (exercises h/c carry across grid steps)
    out_chunked = jax.block_until_ready(
        bayesian_lstm_forward(x, eps, params, time_chunk=4))
    assert jnp.allclose(out_chunked, ref, atol=5e-4, rtol=5e-4), "chunked kernel mismatch"

    # bf16 MXU operands (v6e/v7x fast path), f32 accumulation + elementwise
    out_bf16 = jax.block_until_ready(
        bayesian_lstm_forward(x, eps, params, compute_dtype=jnp.bfloat16))
    assert jnp.allclose(out_bf16, ref, atol=1e-1, rtol=1e-1), "bf16 kernel mismatch"

    print("KERNEL_OK")
</pallas_src>

<mosaic_0001>
module attributes {stable_mosaic.version = 11 : i64} {
  func.func @bayesian_lstm_kernel(%arg0: i32, %arg1: memref<8x8x128xf32, #tpu.memory_space<vmem>>, %arg2: memref<8x8x128xf32, #tpu.memory_space<vmem>>, %arg3: memref<128x512xf32, #tpu.memory_space<vmem>>, %arg4: memref<128x512xf32, #tpu.memory_space<vmem>>, %arg5: memref<1x512xf32, #tpu.memory_space<vmem>>, %arg6: memref<128x256xf32, #tpu.memory_space<vmem>>, %arg7: memref<1x256xf32, #tpu.memory_space<vmem>>, %arg8: memref<8x8x128xf32, #tpu.memory_space<vmem>>, %arg9: memref<8x128xf32, #tpu.memory_space<vmem>>, %arg10: memref<8x128xf32, #tpu.memory_space<vmem>>, %arg11: memref<8x8x512xf32, #tpu.memory_space<vmem>>, %arg12: memref<8x8x128xf32, #tpu.memory_space<vmem>>) attributes {dimension_semantics = [#tpu.dimension_semantics<arbitrary>], iteration_bounds = array<i64: 1>, scalar_prefetch = 0 : i64, scratch_operands = 4 : i64, tpu.core_type = #tpu.core_type<tc>, window_params = [{transform_indices = @transform_0, window_bounds = array<i64: 8, 8, 128>}, {transform_indices = @transform_1, window_bounds = array<i64: 8, 8, 128>}, {pipeline_mode = #tpu.pipeline_mode<synchronous>, transform_indices = @transform_2, window_bounds = array<i64: 128, 512>}, {pipeline_mode = #tpu.pipeline_mode<synchronous>, transform_indices = @transform_3, window_bounds = array<i64: 128, 512>}, {pipeline_mode = #tpu.pipeline_mode<synchronous>, transform_indices = @transform_4, window_bounds = array<i64: 1, 512>}, {pipeline_mode = #tpu.pipeline_mode<synchronous>, transform_indices = @transform_5, window_bounds = array<i64: 128, 256>}, {pipeline_mode = #tpu.pipeline_mode<synchronous>, transform_indices = @transform_6, window_bounds = array<i64: 1, 256>}, {transform_indices = @transform_7, window_bounds = array<i64: 8, 8, 128>}]} {
    %c0_i32 = arith.constant 0 : i32
    %0 = arith.cmpi eq, %arg0, %c0_i32 : i32
    %1 = arith.extui %0 : i1 to i32
    %c0_i32_0 = arith.constant 0 : i32
    %2 = arith.cmpi ne, %1, %c0_i32_0 : i32
    scf.if %2 {
      %cst_84 = arith.constant 0.000000e+00 : f32
      %235 = vector.broadcast %cst_84 : f32 to vector<8x128xf32>
      %c0_85 = arith.constant 0 : index
      %c0_86 = arith.constant 0 : index
      %236 = vector.load %arg9[%c0_85, %c0_86] : memref<8x128xf32, #tpu.memory_space<vmem>>, vector<8x128xf32>
      tpu.vector_store %arg9[%c0_85, %c0_86], %235 {strides = array<i32>} : memref<8x128xf32, #tpu.memory_space<vmem>>, vector<8x128xf32>,
      %cst_87 = arith.constant 0.000000e+00 : f32
      %237 = vector.broadcast %cst_87 : f32 to vector<8x128xf32>
      %c0_88 = arith.constant 0 : index
      %c0_89 = arith.constant 0 : index
      %238 = vector.load %arg10[%c0_88, %c0_89] : memref<8x128xf32, #tpu.memory_space<vmem>>, vector<8x128xf32>
      tpu.vector_store %arg10[%c0_88, %c0_89], %237 {strides = array<i32>} : memref<8x128xf32, #tpu.memory_space<vmem>>, vector<8x128xf32>,
    } else {
    }
    %c0 = arith.constant 0 : index
    %c0_1 = arith.constant 0 : index
    %3 = vector.load %arg3[%c0, %c0_1] : memref<128x512xf32, #tpu.memory_space<vmem>>, vector<128x512xf32>
    %c0_2 = arith.constant 0 : index
    %c0_3 = arith.constant 0 : index
    %4 = vector.load %arg4[%c0_2, %c0_3] : memref<128x512xf32, #tpu.memory_space<vmem>>, vector<128x512xf32>
    %c0_4 = arith.constant 0 : index
    %c0_5 = arith.constant 0 : index
    %5 = vector.load %arg5[%c0_4, %c0_5] : memref<1x512xf32, #tpu.memory_space<vmem>>, vector<1x512xf32>
    %c0_6 = arith.constant 0 : index
    %c0_7 = arith.constant 0 : index
    %6 = vector.load %arg6[%c0_6, %c0_7] : memref<128x256xf32, #tpu.memory_space<vmem>>, vector<128x256xf32>
    %c0_8 = arith.constant 0 : index
    %c0_9 = arith.constant 0 : index
    %7 = vector.load %arg7[%c0_8, %c0_9] : memref<1x256xf32, #tpu.memory_space<vmem>>, vector<1x256xf32>
    %c0_10 = arith.constant 0 : index
    %c0_11 = arith.constant 0 : index
    %c0_12 = arith.constant 0 : index
    %8 = vector.load %arg1[%c0_10, %c0_11, %c0_12] : memref<8x8x128xf32, #tpu.memory_space<vmem>>, vector<8x8x128xf32>
    %9 = vector.shape_cast %8 : vector<8x8x128xf32> to vector<64x128xf32>
    %cst = arith.constant dense<0.000000e+00> : vector<64x512xf32>
    %10 = tpu.matmul %9, %3, %cst {dimension_numbers = #tpu.dot_dimension_numbers<[1], [0], [0], [1], [0, 0, 1, 1], [], []>} : vector<64x128xf32>, vector<128x512xf32>, vector<64x512xf32> -> vector<64x512xf32>
    %11 = vector.broadcast %5 : vector<1x512xf32> to vector<64x512xf32>
    %12 = arith.addf %10, %11 : vector<64x512xf32>
    %13 = vector.shape_cast %12 : vector<64x512xf32> to vector<8x8x512xf32>
    %c0_13 = arith.constant 0 : index
    %c0_14 = arith.constant 0 : index
    %c0_15 = arith.constant 0 : index
    %14 = vector.load %arg11[%c0_13, %c0_14, %c0_15] : memref<8x8x512xf32, #tpu.memory_space<vmem>>, vector<8x8x512xf32>
    tpu.vector_store %arg11[%c0_13, %c0_14, %c0_15], %13 {strides = array<i32>} : memref<8x8x512xf32, #tpu.memory_space<vmem>>, vector<8x8x512xf32>,
    %c0_16 = arith.constant 0 : index
    %c0_17 = arith.constant 0 : index
    %15 = vector.load %arg9[%c0_16, %c0_17] : memref<8x128xf32, #tpu.memory_space<vmem>>, vector<8x128xf32>
    %c0_18 = arith.constant 0 : index
    %c0_19 = arith.constant 0 : index
    %16 = vector.load %arg10[%c0_18, %c0_19] : memref<8x128xf32, #tpu.memory_space<vmem>>, vector<8x128xf32>
    %c0_i32_20 = arith.constant 0 : i32
    %17 = arith.index_cast %c0_i32_20 : i32 to index
    %c0_21 = arith.constant 0 : index
    %c0_22 = arith.constant 0 : index
    %18 = vector.load %arg11[%17, %c0_21, %c0_22] : memref<8x8x512xf32, #tpu.memory_space<vmem>>, vector<1x8x512xf32>
    %19 = vector.shape_cast %18 : vector<1x8x512xf32> to vector<8x512xf32>
    %cst_23 = arith.constant dense<0.000000e+00> : vector<8x512xf32>
    %20 = tpu.matmul %15, %4, %cst_23 {dimension_numbers = #tpu.dot_dimension_numbers<[1], [0], [0], [1], [0, 0, 1, 1], [], []>} : vector<8x128xf32>, vector<128x512xf32>, vector<8x512xf32> -> vector<8x512xf32>
    %21 = arith.addf %19, %20 : vector<8x512xf32>
    %22 = vector.extract_strided_slice %21 {offsets = [0, 0], sizes = [8, 384], strides = [1, 1]} : vector<8x512xf32> to vector<8x384xf32>
    %23 = arith.negf %22 : vector<8x384xf32>
    %24 = math.exp %23 : vector<8x384xf32>
    %cst_24 = arith.constant 1.000000e+00 : f32
    %25 = vector.broadcast %cst_24 : f32 to vector<8x384xf32>
    %26 = arith.addf %25, %24 : vector<8x384xf32>
    %27 = arith.divf %25, %26 : vector<8x384xf32>
    %28 = vector.extract_strided_slice %27 {offsets = [0, 0], sizes = [8, 128], strides = [1, 1]} : vector<8x384xf32> to vector<8x128xf32>
    %29 = vector.extract_strided_slice %27 {offsets = [0, 128], sizes = [8, 128], strides = [1, 1]} : vector<8x384xf32> to vector<8x128xf32>
    %30 = vector.extract_strided_slice %27 {offsets = [0, 256], sizes = [8, 128], strides = [1, 1]} : vector<8x384xf32> to vector<8x128xf32>
    %31 = vector.extract_strided_slice %21 {offsets = [0, 384], sizes = [8, 128], strides = [1, 1]} : vector<8x512xf32> to vector<8x128xf32>
    %32 = math.tanh %31 : vector<8x128xf32>
    %33 = arith.mulf %29, %16 : vector<8x128xf32>
    %34 = arith.mulf %28, %32 : vector<8x128xf32>
    %35 = arith.addf %33, %34 : vector<8x128xf32>
    %36 = math.tanh %35 : vector<8x128xf32>
    %37 = arith.mulf %30, %36 : vector<8x128xf32>
    %38 = arith.index_cast %c0_i32_20 : i32 to index
    %c0_25 = arith.constant 0 : index
    %c0_26 = arith.constant 0 : index
    %39 = vector.load %arg12[%38, %c0_25, %c0_26] : memref<8x8x128xf32, #tpu.memory_space<vmem>>, vector<1x8x128xf32>
    %40 = vector.shape_cast %39 : vector<1x8x128xf32> to vector<8x128xf32>
    %41 = vector.shape_cast %37 : vector<8x128xf32> to vector<1x8x128xf32>
    tpu.vector_store %arg12[%38, %c0_25, %c0_26], %41 {strides = array<i32>} : memref<8x8x128xf32, #tpu.memory_space<vmem>>, vector<1x8x128xf32>,
    %c1_i32 = arith.constant 1 : i32
    %42 = arith.index_cast %c1_i32 : i32 to index
    %c0_27 = arith.constant 0 : index
    %c0_28 = arith.constant 0 : index
    %43 = vector.load %arg11[%42, %c0_27, %c0_28] : memref<8x8x512xf32, #tpu.memory_space<vmem>>, vector<1x8x512xf32>
    %44 = vector.shape_cast %43 : vector<1x8x512xf32> to vector<8x512xf32>
    %cst_29 = arith.constant dense<0.000000e+00> : vector<8x512xf32>
    %45 = tpu.matmul %37, %4, %cst_29 {dimension_numbers = #tpu.dot_dimension_numbers<[1], [0], [0], [1], [0, 0, 1, 1], [], []>} : vector<8x128xf32>, vector<128x512xf32>, vector<8x512xf32> -> vector<8x512xf32>
    %46 = arith.addf %44, %45 : vector<8x512xf32>
    %47 = vector.extract_strided_slice %46 {offsets = [0, 0], sizes = [8, 384], strides = [1, 1]} : vector<8x512xf32> to vector<8x384xf32>
    %48 = arith.negf %47 : vector<8x384xf32>
    %49 = math.exp %48 : vector<8x384xf32>
    %cst_30 = arith.constant 1.000000e+00 : f32
    %50 = vector.broadcast %cst_30 : f32 to vector<8x384xf32>
    %51 = arith.addf %50, %49 : vector<8x384xf32>
    %52 = arith.divf %50, %51 : vector<8x384xf32>
    %53 = vector.extract_strided_slice %52 {offsets = [0, 0], sizes = [8, 128], strides = [1, 1]} : vector<8x384xf32> to vector<8x128xf32>
    %54 = vector.extract_strided_slice %52 {offsets = [0, 128], sizes = [8, 128], strides = [1, 1]} : vector<8x384xf32> to vector<8x128xf32>
    %55 = vector.extract_strided_slice %52 {offsets = [0, 256], sizes = [8, 128], strides = [1, 1]} : vector<8x384xf32> to vector<8x128xf32>
    %56 = vector.extract_strided_slice %46 {offsets = [0, 384], sizes = [8, 128], strides = [1, 1]} : vector<8x512xf32> to vector<8x128xf32>
    %57 = math.tanh %56 : vector<8x128xf32>
    %58 = arith.mulf %54, %35 : vector<8x128xf32>
    %59 = arith.mulf %53, %57 : vector<8x128xf32>
    %60 = arith.addf %58, %59 : vector<8x128xf32>
    %61 = math.tanh %60 : vector<8x128xf32>
    %62 = arith.mulf %55, %61 : vector<8x128xf32>
    %63 = arith.index_cast %c1_i32 : i32 to index
    %c0_31 = arith.constant 0 : index
    %c0_32 = arith.constant 0 : index
    %64 = vector.load %arg12[%63, %c0_31, %c0_32] : memref<8x8x128xf32, #tpu.memory_space<vmem>>, vector<1x8x128xf32>
    %65 = vector.shape_cast %64 : vector<1x8x128xf32> to vector<8x128xf32>
    %66 = vector.shape_cast %62 : vector<8x128xf32> to vector<1x8x128xf32>
    tpu.vector_store %arg12[%63, %c0_31, %c0_32], %66 {strides = array<i32>} : memref<8x8x128xf32, #tpu.memory_space<vmem>>, vector<1x8x128xf32>,
    %c2_i32 = arith.constant 2 : i32
    %67 = arith.index_cast %c2_i32 : i32 to index
    %c0_33 = arith.constant 0 : index
    %c0_34 = arith.constant 0 : index
    %68 = vector.load %arg11[%67, %c0_33, %c0_34] : memref<8x8x512xf32, #tpu.memory_space<vmem>>, vector<1x8x512xf32>
    %69 = vector.shape_cast %68 : vector<1x8x512xf32> to vector<8x512xf32>
    %cst_35 = arith.constant dense<0.000000e+00> : vector<8x512xf32>
    %70 = tpu.matmul %62, %4, %cst_35 {dimension_numbers = #tpu.dot_dimension_numbers<[1], [0], [0], [1], [0, 0, 1, 1], [], []>} : vector<8x128xf32>, vector<128x512xf32>, vector<8x512xf32> -> vector<8x512xf32>
    %71 = arith.addf %69, %70 : vector<8x512xf32>
    %72 = vector.extract_strided_slice %71 {offsets = [0, 0], sizes = [8, 384], strides = [1, 1]} : vector<8x512xf32> to vector<8x384xf32>
    %73 = arith.negf %72 : vector<8x384xf32>
    %74 = math.exp %73 : vector<8x384xf32>
    %cst_36 = arith.constant 1.000000e+00 : f32
    %75 = vector.broadcast %cst_36 : f32 to vector<8x384xf32>
    %76 = arith.addf %75, %74 : vector<8x384xf32>
    %77 = arith.divf %75, %76 : vector<8x384xf32>
    %78 = vector.extract_strided_slice %77 {offsets = [0, 0], sizes = [8, 128], strides = [1, 1]} : vector<8x384xf32> to vector<8x128xf32>
    %79 = vector.extract_strided_slice %77 {offsets = [0, 128], sizes = [8, 128], strides = [1, 1]} : vector<8x384xf32> to vector<8x128xf32>
    %80 = vector.extract_strided_slice %77 {offsets = [0, 256], sizes = [8, 128], strides = [1, 1]} : vector<8x384xf32> to vector<8x128xf32>
    %81 = vector.extract_strided_slice %71 {offsets = [0, 384], sizes = [8, 128], strides = [1, 1]} : vector<8x512xf32> to vector<8x128xf32>
    %82 = math.tanh %81 : vector<8x128xf32>
    %83 = arith.mulf %79, %60 : vector<8x128xf32>
    %84 = arith.mulf %78, %82 : vector<8x128xf32>
    %85 = arith.addf %83, %84 : vector<8x128xf32>
    %86 = math.tanh %85 : vector<8x128xf32>
    %87 = arith.mulf %80, %86 : vector<8x128xf32>
    %88 = arith.index_cast %c2_i32 : i32 to index
    %c0_37 = arith.constant 0 : index
    %c0_38 = arith.constant 0 : index
    %89 = vector.load %arg12[%88, %c0_37, %c0_38] : memref<8x8x128xf32, #tpu.memory_space<vmem>>, vector<1x8x128xf32>
    %90 = vector.shape_cast %89 : vector<1x8x128xf32> to vector<8x128xf32>
    %91 = vector.shape_cast %87 : vector<8x128xf32> to vector<1x8x128xf32>
    tpu.vector_store %arg12[%88, %c0_37, %c0_38], %91 {strides = array<i32>} : memref<8x8x128xf32, #tpu.memory_space<vmem>>, vector<1x8x128xf32>,
    %c3_i32 = arith.constant 3 : i32
    %92 = arith.index_cast %c3_i32 : i32 to index
    %c0_39 = arith.constant 0 : index
    %c0_40 = arith.constant 0 : index
    %93 = vector.load %arg11[%92, %c0_39, %c0_40] : memref<8x8x512xf32, #tpu.memory_space<vmem>>, vector<1x8x512xf32>
    %94 = vector.shape_cast %93 : vector<1x8x512xf32> to vector<8x512xf32>
    %cst_41 = arith.constant dense<0.000000e+00> : vector<8x512xf32>
    %95 = tpu.matmul %87, %4, %cst_41 {dimension_numbers = #tpu.dot_dimension_numbers<[1], [0], [0], [1], [0, 0, 1, 1], [], []>} : vector<8x128xf32>, vector<128x512xf32>, vector<8x512xf32> -> vector<8x512xf32>
    %96 = arith.addf %94, %95 : vector<8x512xf32>
    %97 = vector.extract_strided_slice %96 {offsets = [0, 0], sizes = [8, 384], strides = [1, 1]} : vector<8x512xf32> to vector<8x384xf32>
    %98 = arith.negf %97 : vector<8x384xf32>
    %99 = math.exp %98 : vector<8x384xf32>
    %cst_42 = arith.constant 1.000000e+00 : f32
    %100 = vector.broadcast %cst_42 : f32 to vector<8x384xf32>
    %101 = arith.addf %100, %99 : vector<8x384xf32>
    %102 = arith.divf %100, %101 : vector<8x384xf32>
    %103 = vector.extract_strided_slice %102 {offsets = [0, 0], sizes = [8, 128], strides = [1, 1]} : vector<8x384xf32> to vector<8x128xf32>
    %104 = vector.extract_strided_slice %102 {offsets = [0, 128], sizes = [8, 128], strides = [1, 1]} : vector<8x384xf32> to vector<8x128xf32>
    %105 = vector.extract_strided_slice %102 {offsets = [0, 256], sizes = [8, 128], strides = [1, 1]} : vector<8x384xf32> to vector<8x128xf32>
    %106 = vector.extract_strided_slice %96 {offsets = [0, 384], sizes = [8, 128], strides = [1, 1]} : vector<8x512xf32> to vector<8x128xf32>
    %107 = math.tanh %106 : vector<8x128xf32>
    %108 = arith.mulf %104, %85 : vector<8x128xf32>
    %109 = arith.mulf %103, %107 : vector<8x128xf32>
    %110 = arith.addf %108, %109 : vector<8x128xf32>
    %111 = math.tanh %110 : vector<8x128xf32>
    %112 = arith.mulf %105, %111 : vector<8x128xf32>
    %113 = arith.index_cast %c3_i32 : i32 to index
    %c0_43 = arith.constant 0 : index
    %c0_44 = arith.constant 0 : index
    %114 = vector.load %arg12[%113, %c0_43, %c0_44] : memref<8x8x128xf32, #tpu.memory_space<vmem>>, vector<1x8x128xf32>
    %115 = vector.shape_cast %114 : vector<1x8x128xf32> to vector<8x128xf32>
    %116 = vector.shape_cast %112 : vector<8x128xf32> to vector<1x8x128xf32>
    tpu.vector_store %arg12[%113, %c0_43, %c0_44], %116 {strides = array<i32>} : memref<8x8x128xf32, #tpu.memory_space<vmem>>, vector<1x8x128xf32>,
    %c4_i32 = arith.constant 4 : i32
    %117 = arith.index_cast %c4_i32 : i32 to index
    %c0_45 = arith.constant 0 : index
    %c0_46 = arith.constant 0 : index
    %118 = vector.load %arg11[%117, %c0_45, %c0_46] : memref<8x8x512xf32, #tpu.memory_space<vmem>>, vector<1x8x512xf32>
    %119 = vector.shape_cast %118 : vector<1x8x512xf32> to vector<8x512xf32>
    %cst_47 = arith.constant dense<0.000000e+00> : vector<8x512xf32>
    %120 = tpu.matmul %112, %4, %cst_47 {dimension_numbers = #tpu.dot_dimension_numbers<[1], [0], [0], [1], [0, 0, 1, 1], [], []>} : vector<8x128xf32>, vector<128x512xf32>, vector<8x512xf32> -> vector<8x512xf32>
    %121 = arith.addf %119, %120 : vector<8x512xf32>
    %122 = vector.extract_strided_slice %121 {offsets = [0, 0], sizes = [8, 384], strides = [1, 1]} : vector<8x512xf32> to vector<8x384xf32>
    %123 = arith.negf %122 : vector<8x384xf32>
    %124 = math.exp %123 : vector<8x384xf32>
    %cst_48 = arith.constant 1.000000e+00 : f32
    %125 = vector.broadcast %cst_48 : f32 to vector<8x384xf32>
    %126 = arith.addf %125, %124 : vector<8x384xf32>
    %127 = arith.divf %125, %126 : vector<8x384xf32>
    %128 = vector.extract_strided_slice %127 {offsets = [0, 0], sizes = [8, 128], strides = [1, 1]} : vector<8x384xf32> to vector<8x128xf32>
    %129 = vector.extract_strided_slice %127 {offsets = [0, 128], sizes = [8, 128], strides = [1, 1]} : vector<8x384xf32> to vector<8x128xf32>
    %130 = vector.extract_strided_slice %127 {offsets = [0, 256], sizes = [8, 128], strides = [1, 1]} : vector<8x384xf32> to vector<8x128xf32>
    %131 = vector.extract_strided_slice %121 {offsets = [0, 384], sizes = [8, 128], strides = [1, 1]} : vector<8x512xf32> to vector<8x128xf32>
    %132 = math.tanh %131 : vector<8x128xf32>
    %133 = arith.mulf %129, %110 : vector<8x128xf32>
    %134 = arith.mulf %128, %132 : vector<8x128xf32>
    %135 = arith.addf %133, %134 : vector<8x128xf32>
    %136 = math.tanh %135 : vector<8x128xf32>
    %137 = arith.mulf %130, %136 : vector<8x128xf32>
    %138 = arith.index_cast %c4_i32 : i32 to index
    %c0_49 = arith.constant 0 : index
    %c0_50 = arith.constant 0 : index
    %139 = vector.load %arg12[%138, %c0_49, %c0_50] : memref<8x8x128xf32, #tpu.memory_space<vmem>>, vector<1x8x128xf32>
    %140 = vector.shape_cast %139 : vector<1x8x128xf32> to vector<8x128xf32>
    %141 = vector.shape_cast %137 : vector<8x128xf32> to vector<1x8x128xf32>
    tpu.vector_store %arg12[%138, %c0_49, %c0_50], %141 {strides = array<i32>} : memref<8x8x128xf32, #tpu.memory_space<vmem>>, vector<1x8x128xf32>,
    %c5_i32 = arith.constant 5 : i32
    %142 = arith.index_cast %c5_i32 : i32 to index
    %c0_51 = arith.constant 0 : index
    %c0_52 = arith.constant 0 : index
    %143 = vector.load %arg11[%142, %c0_51, %c0_52] : memref<8x8x512xf32, #tpu.memory_space<vmem>>, vector<1x8x512xf32>
    %144 = vector.shape_cast %143 : vector<1x8x512xf32> to vector<8x512xf32>
    %cst_53 = arith.constant dense<0.000000e+00> : vector<8x512xf32>
    %145 = tpu.matmul %137, %4, %cst_53 {dimension_numbers = #tpu.dot_dimension_numbers<[1], [0], [0], [1], [0, 0, 1, 1], [], []>} : vector<8x128xf32>, vector<128x512xf32>, vector<8x512xf32> -> vector<8x512xf32>
    %146 = arith.addf %144, %145 : vector<8x512xf32>
    %147 = vector.extract_strided_slice %146 {offsets = [0, 0], sizes = [8, 384], strides = [1, 1]} : vector<8x512xf32> to vector<8x384xf32>
    %148 = arith.negf %147 : vector<8x384xf32>
    %149 = math.exp %148 : vector<8x384xf32>
    %cst_54 = arith.constant 1.000000e+00 : f32
    %150 = vector.broadcast %cst_54 : f32 to vector<8x384xf32>
    %151 = arith.addf %150, %149 : vector<8x384xf32>
    %152 = arith.divf %150, %151 : vector<8x384xf32>
    %153 = vector.extract_strided_slice %152 {offsets = [0, 0], sizes = [8, 128], strides = [1, 1]} : vector<8x384xf32> to vector<8x128xf32>
    %154 = vector.extract_strided_slice %152 {offsets = [0, 128], sizes = [8, 128], strides = [1, 1]} : vector<8x384xf32> to vector<8x128xf32>
    %155 = vector.extract_strided_slice %152 {offsets = [0, 256], sizes = [8, 128], strides = [1, 1]} : vector<8x384xf32> to vector<8x128xf32>
    %156 = vector.extract_strided_slice %146 {offsets = [0, 384], sizes = [8, 128], strides = [1, 1]} : vector<8x512xf32> to vector<8x128xf32>
    %157 = math.tanh %156 : vector<8x128xf32>
    %158 = arith.mulf %154, %135 : vector<8x128xf32>
    %159 = arith.mulf %153, %157 : vector<8x128xf32>
    %160 = arith.addf %158, %159 : vector<8x128xf32>
    %161 = math.tanh %160 : vector<8x128xf32>
    %162 = arith.mulf %155, %161 : vector<8x128xf32>
    %163 = arith.index_cast %c5_i32 : i32 to index
    %c0_55 = arith.constant 0 : index
    %c0_56 = arith.constant 0 : index
    %164 = vector.load %arg12[%163, %c0_55, %c0_56] : memref<8x8x128xf32, #tpu.memory_space<vmem>>, vector<1x8x128xf32>
    %165 = vector.shape_cast %164 : vector<1x8x128xf32> to vector<8x128xf32>
    %166 = vector.shape_cast %162 : vector<8x128xf32> to vector<1x8x128xf32>
    tpu.vector_store %arg12[%163, %c0_55, %c0_56], %166 {strides = array<i32>} : memref<8x8x128xf32, #tpu.memory_space<vmem>>, vector<1x8x128xf32>,
    %c6_i32 = arith.constant 6 : i32
    %167 = arith.index_cast %c6_i32 : i32 to index
    %c0_57 = arith.constant 0 : index
    %c0_58 = arith.constant 0 : index
    %168 = vector.load %arg11[%167, %c0_57, %c0_58] : memref<8x8x512xf32, #tpu.memory_space<vmem>>, vector<1x8x512xf32>
    %169 = vector.shape_cast %168 : vector<1x8x512xf32> to vector<8x512xf32>
    %cst_59 = arith.constant dense<0.000000e+00> : vector<8x512xf32>
    %170 = tpu.matmul %162, %4, %cst_59 {dimension_numbers = #tpu.dot_dimension_numbers<[1], [0], [0], [1], [0, 0, 1, 1], [], []>} : vector<8x128xf32>, vector<128x512xf32>, vector<8x512xf32> -> vector<8x512xf32>
    %171 = arith.addf %169, %170 : vector<8x512xf32>
    %172 = vector.extract_strided_slice %171 {offsets = [0, 0], sizes = [8, 384], strides = [1, 1]} : vector<8x512xf32> to vector<8x384xf32>
    %173 = arith.negf %172 : vector<8x384xf32>
    %174 = math.exp %173 : vector<8x384xf32>
    %cst_60 = arith.constant 1.000000e+00 : f32
    %175 = vector.broadcast %cst_60 : f32 to vector<8x384xf32>
    %176 = arith.addf %175, %174 : vector<8x384xf32>
    %177 = arith.divf %175, %176 : vector<8x384xf32>
    %178 = vector.extract_strided_slice %177 {offsets = [0, 0], sizes = [8, 128], strides = [1, 1]} : vector<8x384xf32> to vector<8x128xf32>
    %179 = vector.extract_strided_slice %177 {offsets = [0, 128], sizes = [8, 128], strides = [1, 1]} : vector<8x384xf32> to vector<8x128xf32>
    %180 = vector.extract_strided_slice %177 {offsets = [0, 256], sizes = [8, 128], strides = [1, 1]} : vector<8x384xf32> to vector<8x128xf32>
    %181 = vector.extract_strided_slice %171 {offsets = [0, 384], sizes = [8, 128], strides = [1, 1]} : vector<8x512xf32> to vector<8x128xf32>
    %182 = math.tanh %181 : vector<8x128xf32>
    %183 = arith.mulf %179, %160 : vector<8x128xf32>
    %184 = arith.mulf %178, %182 : vector<8x128xf32>
    %185 = arith.addf %183, %184 : vector<8x128xf32>
    %186 = math.tanh %185 : vector<8x128xf32>
    %187 = arith.mulf %180, %186 : vector<8x128xf32>
    %188 = arith.index_cast %c6_i32 : i32 to index
    %c0_61 = arith.constant 0 : index
    %c0_62 = arith.constant 0 : index
    %189 = vector.load %arg12[%188, %c0_61, %c0_62] : memref<8x8x128xf32, #tpu.memory_space<vmem>>, vector<1x8x128xf32>
    %190 = vector.shape_cast %189 : vector<1x8x128xf32> to vector<8x128xf32>
    %191 = vector.shape_cast %187 : vector<8x128xf32> to vector<1x8x128xf32>
    tpu.vector_store %arg12[%188, %c0_61, %c0_62], %191 {strides = array<i32>} : memref<8x8x128xf32, #tpu.memory_space<vmem>>, vector<1x8x128xf32>,
    %c7_i32 = arith.constant 7 : i32
    %192 = arith.index_cast %c7_i32 : i32 to index
    %c0_63 = arith.constant 0 : index
    %c0_64 = arith.constant 0 : index
    %193 = vector.load %arg11[%192, %c0_63, %c0_64] : memref<8x8x512xf32, #tpu.memory_space<vmem>>, vector<1x8x512xf32>
    %194 = vector.shape_cast %193 : vector<1x8x512xf32> to vector<8x512xf32>
    %cst_65 = arith.constant dense<0.000000e+00> : vector<8x512xf32>
    %195 = tpu.matmul %187, %4, %cst_65 {dimension_numbers = #tpu.dot_dimension_numbers<[1], [0], [0], [1], [0, 0, 1, 1], [], []>} : vector<8x128xf32>, vector<128x512xf32>, vector<8x512xf32> -> vector<8x512xf32>
    %196 = arith.addf %194, %195 : vector<8x512xf32>
    %197 = vector.extract_strided_slice %196 {offsets = [0, 0], sizes = [8, 384], strides = [1, 1]} : vector<8x512xf32> to vector<8x384xf32>
    %198 = arith.negf %197 : vector<8x384xf32>
    %199 = math.exp %198 : vector<8x384xf32>
    %cst_66 = arith.constant 1.000000e+00 : f32
    %200 = vector.broadcast %cst_66 : f32 to vector<8x384xf32>
    %201 = arith.addf %200, %199 : vector<8x384xf32>
    %202 = arith.divf %200, %201 : vector<8x384xf32>
    %203 = vector.extract_strided_slice %202 {offsets = [0, 0], sizes = [8, 128], strides = [1, 1]} : vector<8x384xf32> to vector<8x128xf32>
    %204 = vector.extract_strided_slice %202 {offsets = [0, 128], sizes = [8, 128], strides = [1, 1]} : vector<8x384xf32> to vector<8x128xf32>
    %205 = vector.extract_strided_slice %202 {offsets = [0, 256], sizes = [8, 128], strides = [1, 1]} : vector<8x384xf32> to vector<8x128xf32>
    %206 = vector.extract_strided_slice %196 {offsets = [0, 384], sizes = [8, 128], strides = [1, 1]} : vector<8x512xf32> to vector<8x128xf32>
    %207 = math.tanh %206 : vector<8x128xf32>
    %208 = arith.mulf %204, %185 : vector<8x128xf32>
    %209 = arith.mulf %203, %207 : vector<8x128xf32>
    %210 = arith.addf %208, %209 : vector<8x128xf32>
    %211 = math.tanh %210 : vector<8x128xf32>
    %212 = arith.mulf %205, %211 : vector<8x128xf32>
    %213 = arith.index_cast %c7_i32 : i32 to index
    %c0_67 = arith.constant 0 : index
    %c0_68 = arith.constant 0 : index
    %214 = vector.load %arg12[%213, %c0_67, %c0_68] : memref<8x8x128xf32, #tpu.memory_space<vmem>>, vector<1x8x128xf32>
    %215 = vector.shape_cast %214 : vector<1x8x128xf32> to vector<8x128xf32>
    %216 = vector.shape_cast %212 : vector<8x128xf32> to vector<1x8x128xf32>
    tpu.vector_store %arg12[%213, %c0_67, %c0_68], %216 {strides = array<i32>} : memref<8x8x128xf32, #tpu.memory_space<vmem>>, vector<1x8x128xf32>,
    %c8_i32 = arith.constant 8 : i32
    %c0_69 = arith.constant 0 : index
    %c0_70 = arith.constant 0 : index
    %217 = vector.load %arg9[%c0_69, %c0_70] : memref<8x128xf32, #tpu.memory_space<vmem>>, vector<8x128xf32>
    tpu.vector_store %arg9[%c0_69, %c0_70], %212 {strides = array<i32>} : memref<8x128xf32, #tpu.memory_space<vmem>>, vector<8x128xf32>,
    %c0_71 = arith.constant 0 : index
    %c0_72 = arith.constant 0 : index
    %218 = vector.load %arg10[%c0_71, %c0_72] : memref<8x128xf32, #tpu.memory_space<vmem>>, vector<8x128xf32>
    tpu.vector_store %arg10[%c0_71, %c0_72], %210 {strides = array<i32>} : memref<8x128xf32, #tpu.memory_space<vmem>>, vector<8x128xf32>,
    %c0_73 = arith.constant 0 : index
    %c0_74 = arith.constant 0 : index
    %c0_75 = arith.constant 0 : index
    %219 = vector.load %arg12[%c0_73, %c0_74, %c0_75] : memref<8x8x128xf32, #tpu.memory_space<vmem>>, vector<8x8x128xf32>
    %220 = vector.shape_cast %219 : vector<8x8x128xf32> to vector<64x128xf32>
    %cst_76 = arith.constant dense<0.000000e+00> : vector<64x256xf32>
    %221 = tpu.matmul %220, %6, %cst_76 {dimension_numbers = #tpu.dot_dimension_numbers<[1], [0], [0], [1], [0, 0, 1, 1], [], []>} : vector<64x128xf32>, vector<128x256xf32>, vector<64x256xf32> -> vector<64x256xf32>
    %222 = vector.broadcast %7 : vector<1x256xf32> to vector<64x256xf32>
    %223 = arith.addf %221, %222 : vector<64x256xf32>
    %224 = vector.extract_strided_slice %223 {offsets = [0, 0], sizes = [64, 128], strides = [1, 1]} : vector<64x256xf32> to vector<64x128xf32>
    %225 = vector.extract_strided_slice %223 {offsets = [0, 128], sizes = [64, 128], strides = [1, 1]} : vector<64x256xf32> to vector<64x128xf32>
    %c0_77 = arith.constant 0 : index
    %c0_78 = arith.constant 0 : index
    %c0_79 = arith.constant 0 : index
    %226 = vector.load %arg2[%c0_77, %c0_78, %c0_79] : memref<8x8x128xf32, #tpu.memory_space<vmem>>, vector<8x8x128xf32>
    %227 = vector.shape_cast %226 : vector<8x8x128xf32> to vector<64x128xf32>
    %cst_80 = arith.constant 5.000000e-01 : f32
    %228 = vector.broadcast %cst_80 : f32 to vector<64x128xf32>
    %229 = arith.mulf %228, %225 : vector<64x128xf32>
    %230 = math.exp %229 : vector<64x128xf32>
    %231 = arith.mulf %227, %230 : vector<64x128xf32>
    %232 = arith.addf %224, %231 : vector<64x128xf32>
    %233 = vector.shape_cast %232 : vector<64x128xf32> to vector<8x8x128xf32>
    %c0_81 = arith.constant 0 : index
    %c0_82 = arith.constant 0 : index
    %c0_83 = arith.constant 0 : index
    %234 = vector.load %arg8[%c0_81, %c0_82, %c0_83] : memref<8x8x128xf32, #tpu.memory_space<vmem>>, vector<8x8x128xf32>
    tpu.vector_store %arg8[%c0_81, %c0_82, %c0_83], %233 {strides = array<i32>} : memref<8x8x128xf32, #tpu.memory_space<vmem>>, vector<8x8x128xf32>,
    return
  }
  func.func @transform_0(%arg0: i32) -> (i32, i32, i32) {
    %c0_i32 = arith.constant 0 : i32
    %c0_i32_0 = arith.constant 0 : i32
    %c0_i32_1 = arith.constant 0 : i32
    return %arg0, %c0_i32, %c0_i32_0 : i32, i32, i32
  }
  func.func @transform_1(%arg0: i32) -> (i32, i32, i32) {
    %c0_i32 = arith.constant 0 : i32
    %c0_i32_0 = arith.constant 0 : i32
    %c0_i32_1 = arith.constant 0 : i32
    return %arg0, %c0_i32, %c0_i32_0 : i32, i32, i32
  }
  func.func @transform_2(%arg0: i32) -> (i32, i32) {
    %c0_i32 = arith.constant 0 : i32
    %c0_i32_0 = arith.constant 0 : i32
    %c0_i32_1 = arith.constant 0 : i32
    return %c0_i32, %c0_i32_0 : i32, i32
  }
  func.func @transform_3(%arg0: i32) -> (i32, i32) {
    %c0_i32 = arith.constant 0 : i32
    %c0_i32_0 = arith.constant 0 : i32
    %c0_i32_1 = arith.constant 0 : i32
    return %c0_i32, %c0_i32_0 : i32, i32
  }
  func.func @transform_4(%arg0: i32) -> (i32, i32) {
    %c0_i32 = arith.constant 0 : i32
    %c0_i32_0 = arith.constant 0 : i32
    %c0_i32_1 = arith.constant 0 : i32
    return %c0_i32, %c0_i32_0 : i32, i32
  }
  func.func @transform_5(%arg0: i32) -> (i32, i32) {
    %c0_i32 = arith.constant 0 : i32
    %c0_i32_0 = arith.constant 0 : i32
    %c0_i32_1 = arith.constant 0 : i32
    return %c0_i32, %c0_i32_0 : i32, i32
  }
  func.func @transform_6(%arg0: i32) -> (i32, i32) {
    %c0_i32 = arith.constant 0 : i32
    %c0_i32_0 = arith.constant 0 : i32
    %c0_i32_1 = arith.constant 0 : i32
    return %c0_i32, %c0_i32_0 : i32, i32
  }
  func.func @transform_7(%arg0: i32) -> (i32, i32, i32) {
    %c0_i32 = arith.constant 0 : i32
    %c0_i32_0 = arith.constant 0 : i32
    %c0_i32_1 = arith.constant 0 : i32
    return %arg0, %c0_i32, %c0_i32_0 : i32, i32, i32
  }
}

</mosaic_0001>

<bundles_post_ra>
// kernel: tpu_custom_call.1
= control target key start
LH: loop header
LB: loop body
LE: loop exit
PB: predicated region body
PF: predicated region fallthrough
CT: control target
= control target key end

     0   :  { %12 = vsyncpa [#allocation7], 0  ;;  %s3867_s0 = inlined_call_operand.hbm [shape: f32[8,8,128], index: 0, kind: input, shape index: {}]   ;;  %s3868_s1 = inlined_call_operand.hbm [shape: f32[8,8,128], index: 1, kind: input, shape index: {}]   ;;  %s3869_s2 = inlined_call_operand.hbm [shape: f32[128,512], index: 2, kind: input, shape index: {}]   ;;  %s3870_s3 = inlined_call_operand.hbm [shape: f32[128,512], index: 3, kind: input, shape index: {}]   ;;  %s3871_s4 = inlined_call_operand.vmem [shape: f32[1,512], index: 4, kind: input, shape index: {}]   ;;  %s3872_s5 = inlined_call_operand.hbm [shape: f32[128,256], index: 5, kind: input, shape index: {}]   ;;  %s3873_s6 = inlined_call_operand.vmem [shape: f32[1,256], index: 6, kind: input, shape index: {}]   ;;  %s3874_s7 = inlined_call_operand.hbm [shape: f32[8,8,128], index: 7, kind: output, shape index: {}]  }
   0x1   :  { %13 = vsyncpa [#allocation10], 0 }
   0x2   :  { %14 = vsyncpa [#allocation13], 0 }
   0x3   :  { %15 = vsyncpa [#allocation8], 0  ;;  %s3168_s24 = smov [#allocation9]   ;;  %s3028_s28 = scalar_lea.hbm %s3868_s1, 1024 }
   0x4   :  { %s33_s25 = sshll.u32 %s3168_s24, 4  ;;  %p3029_p0 = scmp.ne.s32.totalorder %s3868_s1, %s3028_s28  ;;  %s34_s25 = int_to_ptr.vmem [resolvable:$true] %s33_s25 }
   0x5   :  { %p3032_p1 = scmp.lt.u32.totalorder %s3028_s28, %s3868_s1 }
   0x7   :  { %p3034_p2 = pnand %p3032_p1, %p3029_p0 }
   0x9   :  { %3037 = shalt.err (!%p3034_p2)
}
   0xa   :  { %s3038_s10 = scalar_lea.vmem %s34_s25, 1024  ;;  %p3043_p4 = scmp.lt.s32.totalorder %s34_s25, %s34_s25 }
   0xb   :  { %p3039_p3 = scmp.ne.s32.totalorder %s34_s25, %s3038_s10  ;;  %p3044_p5 = scmp.lt.s32.totalorder %s3038_s10, %s3038_s10 }
   0xd   :  { %p3045_p6 = por %p3044_p5, %p3043_p4 }
   0xf   :  { %p3046_p7 = pnand %p3045_p6, %p3039_p3 }
  0x11   :  { %3049 = shalt.err (!%p3046_p7)
}
  0x12   :  { %s3169_s11 = smov 128   ;;  %s3170_s12 = smov 8  }
  0x13   :  { %39 = dma.hbm_to_vmem [thread:$0]  %s3868_s1, 1024, %s34_s25, [#allocation10], %s3169_s11, %s3169_s11, %s3170_s12  }
  0x14   :  { %s3171_s15 = smov [#allocation12]   ;;  %s3172_s17 = smov [#allocation6]  }
  0x15   :  { %s57_s16 = sshll.u32 %s3171_s15, 4  ;;  %s21_s18 = sshll.u32 %s3172_s17, 4  ;;  %s58_s16 = int_to_ptr.vmem [resolvable:$true] %s57_s16  ;;  %s22_s18 = int_to_ptr.vmem [resolvable:$true] %s21_s18 }
  0x16   :  { %s3050_s21 = scalar_lea.hbm %s3870_s3, 8192 }
  0x17   :  { %p3051_p8 = scmp.ne.s32.totalorder %s3870_s3, %s3050_s21  ;;  %p3054_p9 = scmp.lt.u32.totalorder %s3050_s21, %s3870_s3 }
  0x19   :  { %p3056_p10 = pnand %p3054_p9, %p3051_p8 }
  0x1b   :  { %3059 = shalt.err (!%p3056_p10)
}
  0x1c   :  { %s3060_s1 = scalar_lea.vmem %s58_s16, 8192  ;;  %p3065_p12 = scmp.lt.s32.totalorder %s58_s16, %s58_s16 }
  0x1d   :  { %p3061_p11 = scmp.ne.s32.totalorder %s58_s16, %s3060_s1  ;;  %p3066_p13 = scmp.lt.s32.totalorder %s3060_s1, %s3060_s1 }
  0x1f   :  { %p3067_p0 = por %p3066_p13, %p3065_p12 }
  0x21   :  { %p3068_p1 = pnand %p3067_p0, %p3061_p11 }
  0x23   :  { %3071 = shalt.err (!%p3068_p1)
}
  0x24   :  { %s3173_s25 = smov 512   ;;  %s3174_s27 = smov 32  }
  0x25   :  { %63 = dma.hbm_to_vmem [thread:$0]  %s3870_s3, 8192, %s58_s16, [#allocation13], %s3173_s25, %s3173_s25, %s3174_s27  }
  0x26   :  { %s3072_s9 = scalar_lea.hbm %s3867_s0, 1024 }
  0x27   :  { %p3073_p2 = scmp.ne.s32.totalorder %s3867_s0, %s3072_s9  ;;  %p3076_p3 = scmp.lt.u32.totalorder %s3072_s9, %s3867_s0 }
  0x29   :  { %p3078_p4 = pnand %p3076_p3, %p3073_p2 }
  0x2b   :  { %3081 = shalt.err (!%p3078_p4)
}
  0x2c   :  { %s3082_s17 = scalar_lea.vmem %s22_s18, 1024  ;;  %p3087_p6 = scmp.lt.s32.totalorder %s22_s18, %s22_s18 }
  0x2d   :  { %p3083_p5 = scmp.ne.s32.totalorder %s22_s18, %s3082_s17  ;;  %p3088_p7 = scmp.lt.s32.totalorder %s3082_s17, %s3082_s17 }
  0x2f   :  { %p3089_p8 = por %p3088_p7, %p3087_p6 }
  0x31   :  { %p3090_p9 = pnand %p3089_p8, %p3083_p5 }
  0x33   :  { %3093 = shalt.err (!%p3090_p9)
}
  0x34   :  { %27 = dma.hbm_to_vmem [thread:$0]  %s3867_s0, 1024, %s22_s18, [#allocation7], %s3169_s11, %s3169_s11, %s3170_s12  }
  0x35   :  { %s3175_s19 = smov [#allocation11]   ;;  %s3176_s21 = smov [#allocation14]  }
  0x36   :  { %s45_s20 = sshll.u32 %s3175_s19, 4  ;;  %s71_s22 = sshll.u32 %s3176_s21, 4  ;;  %s46_s20 = int_to_ptr.vmem [resolvable:$true] %s45_s20  ;;  %s72_s22 = int_to_ptr.vmem [resolvable:$true] %s71_s22 }
  0x37   :  { %s3094_s26 = scalar_lea.hbm %s3869_s2, 8192 }
  0x38   :  { %p3095_p10 = scmp.ne.s32.totalorder %s3869_s2, %s3094_s26  ;;  %p3098_p11 = scmp.lt.u32.totalorder %s3094_s26, %s3869_s2 }
  0x3a   :  { %p3100_p12 = pnand %p3098_p11, %p3095_p10 }
  0x3c   :  { %3103 = shalt.err (!%p3100_p12)
}
  0x3d   :  { %s3104_s0 = scalar_lea.vmem %s46_s20, 8192  ;;  %p3109_p0 = scmp.lt.s32.totalorder %s46_s20, %s46_s20 }
  0x3e   :  { %p3105_p13 = scmp.ne.s32.totalorder %s46_s20, %s3104_s0  ;;  %p3110_p1 = scmp.lt.s32.totalorder %s3104_s0, %s3104_s0 }
  0x40   :  { %p3111_p2 = por %p3110_p1, %p3109_p0 }
  0x42   :  { %p3112_p3 = pnand %p3111_p2, %p3105_p13 }
  0x44   :  { %3115 = shalt.err (!%p3112_p3)
}
  0x45   :  { %51 = dma.hbm_to_vmem [thread:$0]  %s3869_s2, 8192, %s46_s20, [#allocation10], %s3173_s25, %s3173_s25, %s3174_s27  }
  0x46   :  { %s3116_s13 = scalar_lea.hbm %s3872_s5, 4096 }
  0x47   :  { %p3117_p4 = scmp.ne.s32.totalorder %s3872_s5, %s3116_s13  ;;  %p3120_p5 = scmp.lt.u32.totalorder %s3116_s13, %s3872_s5 }
  0x49   :  { %p3122_p6 = pnand %p3120_p5, %p3117_p4 }
  0x4b   :  { %3125 = shalt.err (!%p3122_p6)
}
  0x4c   :  { %s3126_s16 = scalar_lea.vmem %s72_s22, 4096  ;;  %p3131_p8 = scmp.lt.s32.totalorder %s72_s22, %s72_s22 }
  0x4d   :  { %p3127_p7 = scmp.ne.s32.totalorder %s72_s22, %s3126_s16  ;;  %p3132_p9 = scmp.lt.s32.totalorder %s3126_s16, %s3126_s16 }
  0x4f   :  { %p3133_p10 = por %p3132_p9, %p3131_p8 }
  0x51   :  { %p3134_p11 = pnand %p3133_p10, %p3127_p7 }
  0x53   :  { %3137 = shalt.err (!%p3134_p11)
}
  0x54   :  { %s3177_s2 = smov 256   ;;  %s3178_s25 = smov 16  }
  0x55   :  { %77 = dma.hbm_to_vmem [thread:$0]  %s3872_s5, 4096, %s72_s22, [#allocation13], %s3177_s2, %s3177_s2, %s3178_s25  }
  0x56   :  { %3160 = dma.done.wait [#allocation7], 1024  }
  0x57   :  { %3161 = vsyncadd [#allocation7], 4294966272 }
  0x58   :  { %3162 = dma.done.wait [#allocation10], 9216  }
  0x59   :  { %3163 = vsyncadd [#allocation10], 4294958080 }
  0x5a   :  { %3164 = dma.done.wait [#allocation13], 12288  }
  0x5b   :  { %3165 = vsyncadd [#allocation13], 4294955008  ;;  %v3877_v0 = vmov 0.0   ;;  %v102_v1 = vld [vmem:[#allocation11 + $0x8] sm:$0xff]  ;;  %v101_v3 = vld [vmem:[#allocation11] sm:$0xff] }
  0x5c   :  { %356 = vmatprep.mubr.f32.mxu1 %v3877_v0  ;;  %620 = vmatprep.mubr.f32.mxu0 %v3877_v0  ;;  %v106_v2 = vld [vmem:[#allocation11 + $0x28] sm:$0xff]  ;;  %v105_v5 = vld [vmem:[#allocation11 + $0x20] sm:$0xff] }
  0x5d   :  { %v2199_v4 = vpack.c.bf16 %v106_v2, %v102_v1  ;;  %v166_v6 = vld [vmem:[#allocation12 + $0x8] sm:$0xff]  ;;  %v2201_v8 = vpack.c.bf16 %v105_v5, %v101_v3  ;;  %v165_v10 = vld [vmem:[#allocation12] sm:$0xff] }
  0x5e   :  { %v170_v7 = vld [vmem:[#allocation12 + $0x28] sm:$0xff]  ;;  %v169_v11 = vld [vmem:[#allocation12 + $0x20] sm:$0xff] }
  0x5f   :  { %v3295_v9 = vpack.c.bf16 %v170_v7, %v166_v6  ;;  %v110_v12 = vld [vmem:[#allocation11 + $0x48] sm:$0xff]  ;;  %2200 = vmatprep.subr.bf16.mxu1 %v2199_v4  ;;  %v3297_v13 = vpack.c.bf16 %v169_v11, %v165_v10  ;;  %v109_v15 = vld [vmem:[#allocation11 + $0x40] sm:$0xff] }
  0x60   :  { %v114_v14 = vld [vmem:[#allocation11 + $0x68] sm:$0xff]  ;;  %v113_v16 = vld [vmem:[#allocation11 + $0x60] sm:$0xff]  ;;  %2202 = vmatpush1.bf16.msra.mxu1 %v2201_v8 }
  0x61   :  { %2264 = vmatprep.subr.bf16.mxu0 %v3295_v9  ;;  %v2203_v17 = vpack.c.bf16 %v114_v14, %v110_v12  ;;  %v2205_v18 = vpack.c.bf16 %v113_v16, %v109_v15  ;;  %v174_v19 = vld [vmem:[#allocation12 + $0x48] sm:$0xff]  ;;  %v173_v21 = vld [vmem:[#allocation12 + $0x40] sm:$0xff] }
  0x62   :  { %v178_v20 = vld [vmem:[#allocation12 + $0x68] sm:$0xff]  ;;  %2266 = vmatpush1.bf16.msra.mxu0 %v3297_v13  ;;  %v177_v23 = vld [vmem:[#allocation12 + $0x60] sm:$0xff] }
  0x63   :  { %v3301_v22 = vpack.c.bf16 %v178_v20, %v174_v19  ;;  %v118_v24 = vld [vmem:[#allocation11 + $0x88] sm:$0xff]  ;;  %2204 = vmatprep.subr.bf16.mxu1 %v2203_v17  ;;  %v3303_v26 = vpack.c.bf16 %v177_v23, %v173_v21  ;;  %v117_v28 = vld [vmem:[#allocation11 + $0x80] sm:$0xff] }
  0x64   :  { %v122_v25 = vld [vmem:[#allocation11 + $0xa8] sm:$0xff]  ;;  %v121_v29 = vld [vmem:[#allocation11 + $0xa0] sm:$0xff]  ;;  %2206 = vmatpush1.bf16.msra.mxu1 %v2205_v18 }
  0x65   :  { %v2207_v27 = vpack.c.bf16 %v122_v25, %v118_v24  ;;  %v182_v30 = vld [vmem:[#allocation12 + $0x88] sm:$0xff]  ;;  %2268 = vmatprep.subr.bf16.mxu0 %v3301_v22  ;;  %v181_v32 = vld [vmem:[#allocation12 + $0x80] sm:$0xff]  ;;  %v2209_v34 = vpack.c.bf16 %v121_v29, %v117_v28 }
  0x66   :  { %v186_v31 = vld [vmem:[#allocation12 + $0xa8] sm:$0xff]  ;;  %v185_v33 = vld [vmem:[#allocation12 + $0xa0] sm:$0xff]  ;;  %2270 = vmatpush1.bf16.msra.mxu0 %v3303_v26 }
  0x67   :  { %v3306_v35 = vpack.c.bf16 %v186_v31, %v182_v30  ;;  %v126_v36 = vld [vmem:[#allocation11 + $0xc8] sm:$0xff]  ;;  %v125_v38 = vld [vmem:[#allocation11 + $0xc0] sm:$0xff]  ;;  %2208 = vmatprep.subr.bf16.mxu1 %v2207_v27  ;;  %v3309_v39 = vpack.c.bf16 %v185_v33, %v181_v32 }
  0x68   :  { %v130_v37 = vld [vmem:[#allocation11 + $0xe8] sm:$0xff]  ;;  %v129_v41 = vld [vmem:[#allocation11 + $0xe0] sm:$0xff]  ;;  %2210 = vmatpush1.bf16.msra.mxu1 %v2209_v34 }
  0x69   :  { %v2211_v40 = vpack.c.bf16 %v130_v37, %v126_v36  ;;  %v190_v42 = vld [vmem:[#allocation12 + $0xc8] sm:$0xff]  ;;  %2272 = vmatprep.subr.bf16.mxu0 %v3306_v35  ;;  %v189_v45 = vld [vmem:[#allocation12 + $0xc0] sm:$0xff]  ;;  %v2213_v49 = vpack.c.bf16 %v129_v41, %v125_v38  ;;  %v104_v37 = vld [vmem:[#allocation11 + $0x18] sm:$0xff] }
  0x6a   :  { %v194_v43 = vld [vmem:[#allocation12 + $0xe8] sm:$0xff]  ;;  %v193_v46 = vld [vmem:[#allocation12 + $0xe0] sm:$0xff]  ;;  %2274 = vmatpush1.bf16.msra.mxu0 %v3309_v39  ;;  %v108_v38 = vld [vmem:[#allocation11 + $0x38] sm:$0xff] }
  0x6b   :  { %v3312_v44 = vpack.c.bf16 %v194_v43, %v190_v42  ;;  %v134_v47 = vld [vmem:[#allocation11 + $0x108] sm:$0xff]  ;;  %2212 = vmatprep.subr.bf16.mxu1 %v2211_v40  ;;  %v3315_v52 = vpack.c.bf16 %v193_v46, %v189_v45  ;;  %v133_v54 = vld [vmem:[#allocation11 + $0x100] sm:$0xff]  ;;  %v2231_v42 = vpack.c.bf16 %v108_v38, %v104_v37  ;;  %v103_v43 = vld [vmem:[#allocation11 + $0x10] sm:$0xff] }
  0x6c   :  { %v138_v48 = vld [vmem:[#allocation11 + $0x128] sm:$0xff]  ;;  %v137_v55 = vld [vmem:[#allocation11 + $0x120] sm:$0xff]  ;;  %2214 = vmatpush1.bf16.msra.mxu1 %v2213_v49  ;;  %v107_v45 = vld [vmem:[#allocation11 + $0x30] sm:$0xff] }
  0x6d   :  { %v198_v50 = vld [vmem:[#allocation12 + $0x108] sm:$0xff]  ;;  %v2215_v53 = vpack.c.bf16 %v138_v48, %v134_v47  ;;  %v197_v56 = vld [vmem:[#allocation12 + $0x100] sm:$0xff]  ;;  %2276 = vmatprep.subr.bf16.mxu0 %v3312_v44  ;;  %v2217_v63 = vpack.c.bf16 %v137_v55, %v133_v54  ;;  %v112_v46 = vld [vmem:[#allocation11 + $0x58] sm:$0xff]  ;;  %v2233_v49 = vpack.c.bf16 %v107_v45, %v103_v43 }
  0x6e   :  { %v202_v51 = vld [vmem:[#allocation12 + $0x128] sm:$0xff]  ;;  %v201_v58 = vld [vmem:[#allocation12 + $0x120] sm:$0xff]  ;;  %2278 = vmatpush1.bf16.msra.mxu0 %v3315_v52  ;;  %v116_v47 = vld [vmem:[#allocation11 + $0x78] sm:$0xff] }
  0x6f   :  { %v3318_v57 = vpack.c.bf16 %v202_v51, %v198_v50  ;;  %v142_v59 = vld [vmem:[#allocation11 + $0x148] sm:$0xff]  ;;  %2216 = vmatprep.subr.bf16.mxu1 %v2215_v53  ;;  %v3321_v1 = vpack.c.bf16 %v201_v58, %v197_v56  ;;  %v141_v3 = vld [vmem:[#allocation11 + $0x140] sm:$0xff]  ;;  %v2235_v50 = vpack.c.bf16 %v116_v47, %v112_v46  ;;  %v111_v51 = vld [vmem:[#allocation11 + $0x50] sm:$0xff] }
  0x70   :  { %v146_v60 = vld [vmem:[#allocation11 + $0x168] sm:$0xff]  ;;  %v145_v4 = vld [vmem:[#allocation11 + $0x160] sm:$0xff]  ;;  %2218 = vmatpush1.bf16.msra.mxu1 %v2217_v63  ;;  %v115_v53 = vld [vmem:[#allocation11 + $0x70] sm:$0xff] }
  0x71   :  { %v206_v61 = vld [vmem:[#allocation12 + $0x148] sm:$0xff]  ;;  %v2219_v2 = vpack.c.bf16 %v146_v60, %v142_v59  ;;  %v205_v5 = vld [vmem:[#allocation12 + $0x140] sm:$0xff]  ;;  %2280 = vmatprep.subr.bf16.mxu0 %v3318_v57  ;;  %v2221_v14 = vpack.c.bf16 %v145_v4, %v141_v3  ;;  %v120_v54 = vld [vmem:[#allocation11 + $0x98] sm:$0xff]  ;;  %v2237_v58 = vpack.c.bf16 %v115_v53, %v111_v51 }
  0x72   :  { %v210_v62 = vld [vmem:[#allocation12 + $0x168] sm:$0xff]  ;;  %v209_v7 = vld [vmem:[#allocation12 + $0x160] sm:$0xff]  ;;  %2282 = vmatpush1.bf16.msra.mxu0 %v3321_v1  ;;  %v124_v55 = vld [vmem:[#allocation11 + $0xb8] sm:$0xff] }
  0x73   :  { %v3324_v6 = vpack.c.bf16 %v210_v62, %v206_v61  ;;  %v150_v8 = vld [vmem:[#allocation11 + $0x188] sm:$0xff]  ;;  %2220 = vmatprep.subr.bf16.mxu1 %v2219_v2  ;;  %v3327_v15 = vpack.c.bf16 %v209_v7, %v205_v5  ;;  %v149_v17 = vld [vmem:[#allocation11 + $0x180] sm:$0xff]  ;;  %v2239_v59 = vpack.c.bf16 %v124_v55, %v120_v54  ;;  %v119_v60 = vld [vmem:[#allocation11 + $0x90] sm:$0xff] }
  0x74   :  { %v154_v10 = vld [vmem:[#allocation11 + $0x1a8] sm:$0xff]  ;;  %v153_v18 = vld [vmem:[#allocation11 + $0x1a0] sm:$0xff]  ;;  %2222 = vmatpush1.bf16.msra.mxu1 %v2221_v14  ;;  %v123_v61 = vld [vmem:[#allocation11 + $0xb0] sm:$0xff] }
  0x75   :  { %v214_v11 = vld [vmem:[#allocation12 + $0x188] sm:$0xff]  ;;  %v2223_v16 = vpack.c.bf16 %v154_v10, %v150_v8  ;;  %v213_v19 = vld [vmem:[#allocation12 + $0x180] sm:$0xff]  ;;  %2284 = vmatprep.subr.bf16.mxu0 %v3324_v6  ;;  %v2225_v28 = vpack.c.bf16 %v153_v18, %v149_v17  ;;  %v128_v62 = vld [vmem:[#allocation11 + $0xd8] sm:$0xff]  ;;  %v2241_v3 = vpack.c.bf16 %v123_v61, %v119_v60 }
  0x76   :  { %v218_v12 = vld [vmem:[#allocation12 + $0x1a8] sm:$0xff]  ;;  %v217_v21 = vld [vmem:[#allocation12 + $0x1a0] sm:$0xff]  ;;  %2286 = vmatpush1.bf16.msra.mxu0 %v3327_v15  ;;  %v132_v63 = vld [vmem:[#allocation11 + $0xf8] sm:$0xff] }
  0x77   :  { %v3330_v20 = vpack.c.bf16 %v218_v12, %v214_v11  ;;  %v158_v23 = vld [vmem:[#allocation11 + $0x1c8] sm:$0xff]  ;;  %2224 = vmatprep.subr.bf16.mxu1 %v2223_v16  ;;  %v3333_v29 = vpack.c.bf16 %v217_v21, %v213_v19  ;;  %v157_v31 = vld [vmem:[#allocation11 + $0x1c0] sm:$0xff]  ;;  %v3356_v2 = vld [vmem:[#allocation6 + $0x10] sm:$0xff]  ;;  %v2243_v4 = vpack.c.bf16 %v132_v63, %v128_v62 }
  0x78   :  { %v162_v24 = vld [vmem:[#allocation11 + $0x1e8] sm:$0xff]  ;;  %v161_v32 = vld [vmem:[#allocation11 + $0x1e0] sm:$0xff]  ;;  %2226 = vmatpush1.bf16.msra.mxu1 %v2225_v28  ;;  %v127_v5 = vld [vmem:[#allocation11 + $0xd0] sm:$0xff] }
  0x79   :  { %v222_v25 = vld [vmem:[#allocation12 + $0x1c8] sm:$0xff]  ;;  %v2227_v30 = vpack.c.bf16 %v162_v24, %v158_v23  ;;  %v221_v33 = vld [vmem:[#allocation12 + $0x1c0] sm:$0xff]  ;;  %2288 = vmatprep.subr.bf16.mxu0 %v3330_v20  ;;  %v2229_v40 = vpack.c.bf16 %v161_v32, %v157_v31  ;;  %v131_v7 = vld [vmem:[#allocation11 + $0xf0] sm:$0xff] }
  0x7a   :  { %v226_v27 = vld [vmem:[#allocation12 + $0x1e8] sm:$0xff]  ;;  %v225_v36 = vld [vmem:[#allocation12 + $0x1e0] sm:$0xff]  ;;  %2290 = vmatpush1.bf16.msra.mxu0 %v3333_v29  ;;  %v136_v8 = vld [vmem:[#allocation11 + $0x118] sm:$0xff]  ;;  %v2245_v12 = vpack.c.bf16 %v131_v7, %v127_v5 }
  0x7b   :  { %v3336_v34 = vpack.c.bf16 %v226_v27, %v222_v25  ;;  %2228 = vmatprep.subr.bf16.mxu1 %v2227_v30  ;;  %v3339_v41 = vpack.c.bf16 %v225_v36, %v221_v33  ;;  %v3342_v48 = vld [vmem:[#allocation6] sm:$0xff]  ;;  %v3348_v56 = vld [vmem:[#allocation6 + $0x8] sm:$0xff]  ;;  %v140_v10 = vld [vmem:[#allocation11 + $0x138] sm:$0xff] }
  0x7c   :  { %2230 = vmatpush1.bf16.msra.mxu1 %v2229_v40  ;;  %v3362_v11 = vld [vmem:[#allocation6 + $0x18] sm:$0xff]  ;;  %v2247_v14 = vpack.c.bf16 %v140_v10, %v136_v8  ;;  %v135_v16 = vld [vmem:[#allocation11 + $0x110] sm:$0xff]  ;;  %v3368_v21 = vld [vmem:[#allocation6 + $0x20] sm:$0xff] }
  0x7d   :  { %2292 = vmatprep.subr.bf16.mxu0 %v3336_v34  ;;  %2232 = vmatprep.subr.bf16.mxu1 %v2231_v42  ;;  %v139_v17 = vld [vmem:[#allocation11 + $0x130] sm:$0xff]  ;;  %v144_v18 = vld [vmem:[#allocation11 + $0x158] sm:$0xff]  ;;  %v3374_v31 = vld [vmem:[#allocation6 + $0x28] sm:$0xff] }
  0x7e   :  { %2294 = vmatpush1.bf16.msra.mxu0 %v3339_v41  ;;  %v148_v19 = vld [vmem:[#allocation11 + $0x178] sm:$0xff]  ;;  %v2249_v23 = vpack.c.bf16 %v139_v17, %v135_v16  ;;  %v143_v25 = vld [vmem:[#allocation11 + $0x150] sm:$0xff] }
  0x7f   :  { %2328 = vmatprep.subr.bf16.mxu0 %v3295_v9  ;;  %357 = vmatmul.mubr.f32.vlgmr.msra.gmra.mrb[0].mxu1 %v3342_v48  ;;  %v2251_v24 = vpack.c.bf16 %v148_v19, %v144_v18  ;;  %v147_v27 = vld [vmem:[#allocation11 + $0x170] sm:$0xff]  ;;  %v152_v28 = vld [vmem:[#allocation11 + $0x198] sm:$0xff] }
  0x80   :  { %2234 = vmatpush1.bf16.msra.mxu1 %v2233_v49  ;;  %362 = vmatprep.mubr.f32.mxu1 %v3877_v0  ;;  %v156_v30 = vld [vmem:[#allocation11 + $0x1b8] sm:$0xff]  ;;  %v2253_v32 = vpack.c.bf16 %v147_v27, %v143_v25  ;;  %v151_v36 = vld [vmem:[#allocation11 + $0x190] sm:$0xff] }
  0x81   :  { %621 = vmatmul.mubr.f32.vlgmr.msra.gmra.mrb[0].mxu0 %v3877_v0  ;;  %2236 = vmatprep.subr.bf16.mxu1 %v2235_v50  ;;  %v2255_v33 = vpack.c.bf16 %v156_v30, %v152_v28  ;;  %v155_v37 = vld [vmem:[#allocation11 + $0x1b0] sm:$0xff]  ;;  %v160_v38 = vld [vmem:[#allocation11 + $0x1d8] sm:$0xff] }
  0x82   :  { %2330 = vmatpush1.bf16.msra.mxu0 %v3297_v13  ;;  %796 = vmatprep.mubr.f32.mxu0 %v3877_v0  ;;  %v164_v40 = vld [vmem:[#allocation11 + $0x1f8] sm:$0xff]  ;;  %v3380_v42 = vld [vmem:[#allocation6 + $0x30] sm:$0xff]  ;;  %v2257_v43 = vpack.c.bf16 %v155_v37, %v151_v36 }
  0x83   :  { %363 = vmatmul.mubr.f32.gmra.mrb[2].mxu1 %v3348_v56  ;;  %2332 = vmatprep.subr.bf16.mxu0 %v3301_v22  ;;  %v2259_v45 = vpack.c.bf16 %v164_v40, %v160_v38  ;;  %v159_v46 = vld [vmem:[#allocation11 + $0x1d0] sm:$0xff]  ;;  %v168_v49 = vld [vmem:[#allocation12 + $0x18] sm:$0xff] }
  0x84   :  { %2238 = vmatpush1.bf16.msra.mxu1 %v2237_v58  ;;  %368 = vmatprep.mubr.f32.mxu1 %v3877_v0  ;;  %v163_v47 = vld [vmem:[#allocation11 + $0x1f0] sm:$0xff]  ;;  %v172_v50 = vld [vmem:[#allocation12 + $0x38] sm:$0xff] }
  0x85   :  { %2240 = vmatprep.subr.bf16.mxu1 %v2239_v59  ;;  %v3386_v51 = vld [vmem:[#allocation6 + $0x38] sm:$0xff]  ;;  %v2261_v53 = vpack.c.bf16 %v163_v47, %v159_v46  ;;  %v3388_v54 = vpack.c.bf16 %v172_v50, %v168_v49  ;;  %v167_v55 = vld [vmem:[#allocation12 + $0x10] sm:$0xff] }
  0x86   :  { %2334 = vmatpush1.bf16.msra.mxu0 %v3303_v26  ;;  %v171_v58 = vld [vmem:[#allocation12 + $0x30] sm:$0xff]  ;;  %v176_v59 = vld [vmem:[#allocation12 + $0x58] sm:$0xff] }
  0x87   :  { %369 = vmatmul.mubr.f32.gmra.mrb[4].mxu1 %v3356_v2  ;;  %2336 = vmatprep.subr.bf16.mxu0 %v3306_v35  ;;  %v180_v60 = vld [vmem:[#allocation12 + $0x78] sm:$0xff]  ;;  %v3394_v61 = vpack.c.bf16 %v171_v58, %v167_v55  ;;  %v175_v63 = vld [vmem:[#allocation12 + $0x50] sm:$0xff] }
  0x88   :  { %2242 = vmatpush1.bf16.msra.mxu1 %v2241_v3  ;;  %374 = vmatprep.mubr.f32.mxu1 %v3877_v0  ;;  %v3397_v62 = vpack.c.bf16 %v180_v60, %v176_v59  ;;  %v179_v3 = vld [vmem:[#allocation12 + $0x70] sm:$0xff]  ;;  %v188_v5 = vld [vmem:[#allocation12 + $0xb8] sm:$0xff]  ;;  %v229_v59 = vld [vmem:[%s3871_s4] sm:$0xf] }
  0x89   :  { %2244 = vmatprep.subr.bf16.mxu1 %v2243_v4  ;;  %v184_v4 = vld [vmem:[#allocation12 + $0x98] sm:$0xff]  ;;  %v3404_v7 = vpack.c.bf16 %v179_v3, %v175_v63  ;;  %v183_v10 = vld [vmem:[#allocation12 + $0x90] sm:$0xff] }
  0x8a   :  { %2338 = vmatpush1.bf16.msra.mxu0 %v3309_v39  ;;  %v3407_v8 = vpack.c.bf16 %v188_v5, %v184_v4  ;;  %v196_v16 = vld [vmem:[#allocation12 + $0xf8] sm:$0xff]  ;;  %v191_v18 = vld [vmem:[#allocation12 + $0xd0] sm:$0xff] }
  0x8b   :  { %375 = vmatmul.mubr.f32.gmra.mrb[6].mxu1 %v3362_v11  ;;  %2340 = vmatprep.subr.bf16.mxu0 %v3312_v44  ;;  %v195_v19 = vld [vmem:[#allocation12 + $0xf0] sm:$0xff]  ;;  %v208_v30 = vld [vmem:[#allocation12 + $0x158] sm:$0xff] }
  0x8c   :  { %2246 = vmatpush1.bf16.msra.mxu1 %v2245_v12  ;;  %380 = vmatprep.mubr.f32.mxu1 %v3877_v0  ;;  %v187_v12 = vld [vmem:[#allocation12 + $0xb0] sm:$0xff]  ;;  %v216_v38 = vld [vmem:[#allocation12 + $0x198] sm:$0xff] }
  0x8d   :  { %2248 = vmatprep.subr.bf16.mxu1 %v2247_v14  ;;  %v192_v14 = vld [vmem:[#allocation12 + $0xd8] sm:$0xff]  ;;  %v199_v27 = vld [vmem:[#allocation12 + $0x110] sm:$0xff] }
  0x8e   :  { %2342 = vmatpush1.bf16.msra.mxu0 %v3315_v52  ;;  %v3415_v17 = vpack.c.bf16 %v196_v16, %v192_v14  ;;  %v203_v28 = vld [vmem:[#allocation12 + $0x130] sm:$0xff]  ;;  %v220_v40 = vld [vmem:[#allocation12 + $0x1b8] sm:$0xff] }
  0x8f   :  { %381 = vmatmul.mubr.f32.gmra.mrb[8].mxu1 %v3368_v21  ;;  %2344 = vmatprep.subr.bf16.mxu0 %v3318_v57  ;;  %v207_v36 = vld [vmem:[#allocation12 + $0x150] sm:$0xff]  ;;  %v224_v47 = vld [vmem:[#allocation12 + $0x1d8] sm:$0xff] }
  0x90   :  { %2250 = vmatpush1.bf16.msra.mxu1 %v2249_v23  ;;  %386 = vmatprep.mubr.f32.mxu1 %v3877_v0  ;;  %v200_v23 = vld [vmem:[#allocation12 + $0x118] sm:$0xff]  ;;  %v211_v37 = vld [vmem:[#allocation12 + $0x170] sm:$0xff] }
  0x91   :  { %2252 = vmatprep.subr.bf16.mxu1 %v2251_v24  ;;  %v204_v24 = vld [vmem:[#allocation12 + $0x138] sm:$0xff]  ;;  %v219_v46 = vld [vmem:[#allocation12 + $0x1b0] sm:$0xff] }
  0x92   :  { %2346 = vmatpush1.bf16.msra.mxu0 %v3321_v1  ;;  %v3423_v25 = vpack.c.bf16 %v204_v24, %v200_v23  ;;  %v228_v49 = vld [vmem:[#allocation12 + $0x1f8] sm:$0xff]  ;;  %v227_v55 = vld [vmem:[#allocation12 + $0x1f0] sm:$0xff] }
  0x93   :  { %387 = vmatmul.mubr.f32.gmra.mrb[10].mxu1 %v3374_v31  ;;  %2348 = vmatprep.subr.bf16.mxu0 %v3324_v6  ;;  %v3447_v50 = vpack.c.bf16 %v228_v49, %v224_v47 }
  0x94   :  { %2254 = vmatpush1.bf16.msra.mxu1 %v2253_v32  ;;  %392 = vmatprep.mubr.f32.mxu1 %v3877_v0  ;;  %v212_v32 = vld [vmem:[#allocation12 + $0x178] sm:$0xff] }
  0x95   :  { %2256 = vmatprep.subr.bf16.mxu1 %v2255_v33  ;;  %v3431_v33 = vpack.c.bf16 %v212_v32, %v208_v30 }
  0x96   :  { %2350 = vmatpush1.bf16.msra.mxu0 %v3327_v15 }
  0x97   :  { %393 = vmatmul.mubr.f32.gmra.mrb[12].mxu1 %v3380_v42  ;;  %2352 = vmatprep.subr.bf16.mxu0 %v3330_v20 }
  0x98   :  { %2258 = vmatpush1.bf16.msra.mxu1 %v2257_v43  ;;  %398 = vmatprep.mubr.f32.mxu1 %v3877_v0  ;;  %v3439_v43 = vpack.c.bf16 %v220_v40, %v216_v38 }
  0x99   :  { %2260 = vmatprep.subr.bf16.mxu1 %v2259_v45  ;;  %v215_v45 = vld [vmem:[#allocation12 + $0x190] sm:$0xff] }
  0x9a   :  { %2354 = vmatpush1.bf16.msra.mxu0 %v3333_v29 }
  0x9b   :  { %399 = vmatmul.mubr.f32.gmra.mrb[14].mxu1 %v3386_v51  ;;  %2356 = vmatprep.subr.bf16.mxu0 %v3336_v34 }
  0x9c   :  { %2262 = vmatpush1.bf16.msra.mxu1 %v2261_v53  ;;  %469 = vmatprep.mubr.f32.mxu1 %v3877_v0  ;;  %v223_v53 = vld [vmem:[#allocation12 + $0x1d0] sm:$0xff] }
  0x9d   :  { %2296 = vmatprep.subr.bf16.mxu1 %v3388_v54  ;;  %v3452_v58 = vpack.c.bf16 %v227_v55, %v223_v53 }
  0x9e   :  { %2358 = vmatpush1.bf16.msra.mxu0 %v3339_v41 }
  0x9f   :  { %470 = vmatmul.mubr.f32.vlgmr.msra.gmra.mrb[16].mxu1 %v3342_v48  ;;  %2392 = vmatprep.subr.bf16.mxu0 %v3295_v9  ;;  %v3412_v48 = vpack.c.bf16 %v187_v12, %v183_v10 }
  0xa0   :  { %2298 = vmatpush1.bf16.msra.mxu1 %v3394_v61  ;;  %475 = vmatprep.mubr.f32.mxu1 %v3877_v0 }
  0xa1   :  { %2300 = vmatprep.subr.bf16.mxu1 %v3397_v62 }
  0xa3   :  { %476 = vmatmul.mubr.f32.gmra.mrb[18].mxu1 %v3348_v56  ;;  %v3420_v56 = vpack.c.bf16 %v195_v19, %v191_v18 }
  0xa4   :  { %2302 = vmatpush1.bf16.msra.mxu1 %v3404_v7  ;;  %481 = vmatprep.mubr.f32.mxu1 %v3877_v0 }
  0xa5   :  { %2304 = vmatprep.subr.bf16.mxu1 %v3407_v8 }
  0xa7   :  { %482 = vmatmul.mubr.f32.gmra.mrb[20].mxu1 %v3356_v2  ;;  %v3428_v2 = vpack.c.bf16 %v203_v28, %v199_v27 }
  0xa8   :  { %2306 = vmatpush1.bf16.msra.mxu1 %v3412_v48  ;;  %487 = vmatprep.mubr.f32.mxu1 %v3877_v0 }
  0xa9   :  { %2308 = vmatprep.subr.bf16.mxu1 %v3415_v17 }
  0xab   :  { %488 = vmatmul.mubr.f32.gmra.mrb[22].mxu1 %v3362_v11  ;;  %v3436_v11 = vpack.c.bf16 %v211_v37, %v207_v36 }
  0xac   :  { %2310 = vmatpush1.bf16.msra.mxu1 %v3420_v56  ;;  %493 = vmatprep.mubr.f32.mxu1 %v3877_v0 }
  0xad   :  { %2312 = vmatprep.subr.bf16.mxu1 %v3423_v25 }
  0xaf   :  { %494 = vmatmul.mubr.f32.gmra.mrb[24].mxu1 %v3368_v21  ;;  %v3444_v21 = vpack.c.bf16 %v219_v46, %v215_v45 }
  0xb0   :  { %2314 = vmatpush1.bf16.msra.mxu1 %v3428_v2  ;;  %499 = vmatprep.mubr.f32.mxu1 %v3877_v0 }
  0xb1   :  { %2316 = vmatprep.subr.bf16.mxu1 %v3431_v33 }
  0xb3   :  { %500 = vmatmul.mubr.f32.gmra.mrb[26].mxu1 %v3374_v31  ;;  %v272_v31 = vlaneseq }
  0xb4   :  { %2318 = vmatpush1.bf16.msra.mxu1 %v3436_v11  ;;  %505 = vmatprep.mubr.f32.mxu1 %v3877_v0 }
  0xb5   :  { %2320 = vmatprep.subr.bf16.mxu1 %v3439_v43 }
  0xb7   :  { %506 = vmatmul.mubr.f32.gmra.mrb[28].mxu1 %v3380_v42  ;;  %v3477_v42 = vshrl.u32 %v272_v31, 7 }
  0xb8   :  { %2322 = vmatpush1.bf16.msra.mxu1 %v3444_v21  ;;  %511 = vmatprep.mubr.f32.mxu1 %v3877_v0 }
  0xb9   :  { %2324 = vmatprep.subr.bf16.mxu1 %v3447_v50  ;;  %3881 = vst [vmem:[#allocation20_spill] sm:$0xff] %v3477_v42  ;;  %v3876_v60 = vsub.s32 1, %v3477_v42 }
  0xbb   :  { %512 = vmatmul.mubr.f32.gmra.mrb[30].mxu1 %v3386_v51  ;;  %v3875_v51 = vsub.s32 0, %v3477_v42  ;;  %v279_v3 = vrot.slane %v229_v59, %v3876_v60 }
  0xbc   :  { %2326 = vmatpush1.bf16.msra.mxu1 %v3452_v58  ;;  %691 = vmatprep.mubr.f32.mxu1 %v3877_v0 }
  0xbd   :  { %2360 = vmatprep.subr.bf16.mxu1 %v3388_v54  ;;  %v275_v63 = vrot.slane %v229_v59, %v3875_v51 }
  0xbf   :  { %692 = vmatmul.mubr.f32.vlgmr.msra.gmra.mrb[16].mxu1 %v3877_v0 }
  0xc0   :  { %2362 = vmatpush1.bf16.msra.mxu1 %v3394_v61  ;;  %867 = vmatprep.mubr.f32.mxu1 %v3877_v0 }
  0xc1   :  { %2364 = vmatprep.subr.bf16.mxu1 %v3397_v62 }
  0xc4   :  { %2366 = vmatpush1.bf16.msra.mxu1 %v3404_v7 }
  0xc5   :  { %2368 = vmatprep.subr.bf16.mxu1 %v3407_v8 }
  0xc8   :  { %2370 = vmatpush1.bf16.msra.mxu1 %v3412_v48 }
  0xc9   :  { %2372 = vmatprep.subr.bf16.mxu1 %v3415_v17 }
  0xcc   :  { %2374 = vmatpush1.bf16.msra.mxu1 %v3420_v56 }
  0xcd   :  { %2376 = vmatprep.subr.bf16.mxu1 %v3423_v25 }
  0xd0   :  { %2378 = vmatpush1.bf16.msra.mxu1 %v3428_v2 }
  0xd1   :  { %2380 = vmatprep.subr.bf16.mxu1 %v3431_v33 }
  0xd4   :  { %2382 = vmatpush1.bf16.msra.mxu1 %v3436_v11 }
  0xd5   :  { %2384 = vmatprep.subr.bf16.mxu1 %v3439_v43 }
  0xd8   :  { %2386 = vmatpush1.bf16.msra.mxu1 %v3444_v21 }
  0xd9   :  { %2388 = vmatprep.subr.bf16.mxu1 %v3447_v50 }
  0xdc   :  { %2390 = vmatpush1.bf16.msra.mxu1 %v3452_v58 }
  0xdd   :  { %2424 = vmatprep.subr.bf16.mxu1 %v3388_v54 }
 0x152   :  { %v358_v4 = vpop.f32.mrb[0].mxu1 }
 0x153   :  { %v359_v5 = vadd.f32 %v358_v4, %v275_v63  ;;  %v360_v10 = vpop.f32.mrb[1].mxu1 }
 0x154   :  { %v622_v12 = vpop.f32.mrb[0].mxu0  ;;  %v361_v14 = vadd.f32 %v360_v10, %v279_v3 }
 0x155   :  { %v624_v16 = vpop.f32.mrb[1].mxu0  ;;  %v698_v18 = vadd.f32 %v622_v12, %v359_v5 }
 0x156   :  { %v699_v19 = vadd.f32 %v624_v16, %v361_v14  ;;  %v364_v23 = vpop.f32.mrb[2].mxu1 }
 0x157   :  { %v3488_v24 = vadd.f32 %v364_v23, %v275_v63  ;;  %v366_v27 = vpop.f32.mrb[3].mxu1 }
 0x158   :  { %v3490_v28 = vadd.f32 %v366_v27, %v279_v3 }
 0x15a   :  { %v370_v30 = vpop.f32.mrb[4].mxu1 }
 0x15b   :  { %v3492_v32 = vadd.f32 %v370_v30, %v275_v63  ;;  %v372_v36 = vpop.f32.mrb[5].mxu1 }
 0x15c   :  { %v3494_v37 = vadd.f32 %v372_v36, %v279_v3 }
 0x15e   :  { %v376_v38 = vpop.f32.mrb[6].mxu1 }
 0x15f   :  { %v3496_v40 = vadd.f32 %v376_v38, %v275_v63  ;;  %v378_v45 = vpop.f32.mrb[7].mxu1 }
 0x160   :  { %v3498_v46 = vadd.f32 %v378_v45, %v279_v3  ;;  %v2176_v45 = vmul.f32 -1.442695, %v699_v19 }
 0x162   :  { %v382_v47 = vpop.f32.mrb[8].mxu1  ;;  %2884 = vpow2.f32 %v2176_v45 }
 0x163   :  { %v3500_v49 = vadd.f32 %v382_v47, %v275_v63  ;;  %v384_v53 = vpop.f32.mrb[9].mxu1  ;;  %v2175_v47 = vmul.f32 -1.442695, %v698_v18 }
 0x164   :  { %v3502_v55 = vadd.f32 %v384_v53, %v279_v3  ;;  %v282_v53 = vsub.s32 2, %v3477_v42 }
 0x165   :  { %2886 = vpow2.f32 %v2175_v47 }
 0x166   :  { %v388_v31 = vpop.f32.mrb[10].mxu1  ;;  %v3518_v51 = vrot.slane %v229_v59, %v282_v53 }
 0x167   :  { %v3504_v4 = vadd.f32 %v388_v31, %v275_v63  ;;  %v390_v5 = vpop.f32.mrb[11].mxu1  ;;  %v286_v31 = vsub.s32 3, %v3477_v42 }
 0x168   :  { %v3506_v10 = vadd.f32 %v390_v5, %v279_v3 }
 0x169   :  { %v3520_v60 = vrot.slane %v229_v59, %v286_v31 }
 0x16a   :  { %v394_v12 = vpop.f32.mrb[12].mxu1 }
 0x16b   :  { %v3508_v14 = vadd.f32 %v394_v12, %v275_v63  ;;  %v396_v16 = vpop.f32.mrb[13].mxu1 }
 0x16c   :  { %v3510_v23 = vadd.f32 %v396_v16, %v279_v3  ;;  %v2885_v5 = vpop.eup %2884 }
 0x16d   :  { %v712_v16 = vadd.f32 1.0, %v2885_v5 }
 0x16e   :  { %v400_v27 = vpop.f32.mrb[14].mxu1 }
 0x16f   :  { %v3512_v30 = vadd.f32 %v400_v27, %v275_v63  ;;  %v402_v36 = vpop.f32.mrb[15].mxu1  ;;  %v2887_v12 = vpop.eup %2886  ;;  %2888 = vrcp.f32 %v712_v16 }
 0x170   :  { %v3514_v38 = vadd.f32 %v402_v36, %v279_v3  ;;  %v711_v63 = vadd.f32 1.0, %v2887_v12 }
 0x171   :  { %3882 = vst [vmem:[#allocation21_spill] sm:$0xff] %v3512_v30 }
 0x172   :  { %3883 = vst [vmem:[#allocation22_spill] sm:$0xff] %v3514_v38  ;;  %2890 = vrcp.f32 %v711_v63 }
 0x179   :  { %v2889_v45 = vpop.eup %2888 }
 0x17a   :  { %v721_v42 = vmul.f32 0.0, %v2889_v45 }
 0x17c   :  { %v2891_v47 = vpop.eup %2890 }
 0x192   :  { %v693_v27 = vpop.f32.mrb[16].mxu1 }
 0x193   :  { %v2839_v3 = vadd.f32 %v693_v27, %v3518_v51  ;;  %v695_v36 = vpop.f32.mrb[17].mxu1 }
 0x194   :  { %v2840_v18 = vadd.f32 %v695_v36, %v3520_v60 }
 0x195   :  { %v2177_v19 = vmul.f32 -1.442695, %v2839_v3 }
 0x196   :  { %2892 = vtanh.f32 %v2840_v18 }
 0x197   :  { %2894 = vpow2.f32 %v2177_v19 }
 0x1a0   :  { %v2893_v0 = vpop.eup %2892 }
 0x1a1   :  { %v2895_v53 = vpop.eup %2894  ;;  %v722_v5 = vmul.f32 %v2893_v0, %v2891_v47  ;;  %v3884_v0 = vmov 0.0  }
 0x1a2   :  { %v713_v59 = vadd.f32 1.0, %v2895_v53 }
 0x1a3   :  { %v3524_v31 = vadd.f32 %v722_v5, %v721_v42 }
 0x1a4   :  { %2896 = vrcp.f32 %v713_v59 }
 0x1a5   :  { %2898 = vtanh.f32 %v3524_v31 }
 0x1ae   :  { %v2897_v12 = vpop.eup %2896 }
 0x1af   :  { %v2899_v16 = vpop.eup %2898 }
 0x1b0   :  { %v3527_v27 = vmul.f32 %v2899_v16, %v2897_v12 }
 0x1b2   :  { %797 = vmatmul.mubr.f32.vlgmr.msra.gmra.mrb[2].mxu0 %v3527_v27  ;;  %868 = vmatmul.mubr.f32.vlgmr.msra.gmra.mrb[18].mxu1 %v3527_v27 }
 0x1b3   :  { %2394 = vmatpush1.bf16.msra.mxu0 %v3297_v13  ;;  %2426 = vmatpush1.bf16.msra.mxu1 %v3394_v61 }
 0x1b4   :  { %2396 = vmatprep.subr.bf16.mxu0 %v3301_v22  ;;  %2428 = vmatprep.subr.bf16.mxu1 %v3397_v62 }
 0x1b5   :  { %973 = vmatprep.mubr.f32.mxu0 %v3884_v0  ;;  %1044 = vmatprep.mubr.f32.mxu1 %v3884_v0 }
 0x1b7   :  { %2398 = vmatpush1.bf16.msra.mxu0 %v3303_v26  ;;  %2430 = vmatpush1.bf16.msra.mxu1 %v3404_v7 }
 0x1b8   :  { %2400 = vmatprep.subr.bf16.mxu0 %v3306_v35  ;;  %2432 = vmatprep.subr.bf16.mxu1 %v3407_v8 }
 0x1bb   :  { %2402 = vmatpush1.bf16.msra.mxu0 %v3309_v39  ;;  %2434 = vmatpush1.bf16.msra.mxu1 %v3412_v48 }
 0x1bc   :  { %2404 = vmatprep.subr.bf16.mxu0 %v3312_v44  ;;  %2436 = vmatprep.subr.bf16.mxu1 %v3415_v17 }
 0x1bf   :  { %2406 = vmatpush1.bf16.msra.mxu0 %v3315_v52  ;;  %2438 = vmatpush1.bf16.msra.mxu1 %v3420_v56 }
 0x1c0   :  { %2408 = vmatprep.subr.bf16.mxu0 %v3318_v57  ;;  %2440 = vmatprep.subr.bf16.mxu1 %v3423_v25 }
 0x1c3   :  { %2410 = vmatpush1.bf16.msra.mxu0 %v3321_v1  ;;  %2442 = vmatpush1.bf16.msra.mxu1 %v3428_v2 }
 0x1c4   :  { %2412 = vmatprep.subr.bf16.mxu0 %v3324_v6  ;;  %2444 = vmatprep.subr.bf16.mxu1 %v3431_v33 }
 0x1c7   :  { %2414 = vmatpush1.bf16.msra.mxu0 %v3327_v15  ;;  %2446 = vmatpush1.bf16.msra.mxu1 %v3436_v11 }
 0x1c8   :  { %2416 = vmatprep.subr.bf16.mxu0 %v3330_v20  ;;  %2448 = vmatprep.subr.bf16.mxu1 %v3439_v43 }
 0x1cb   :  { %2418 = vmatpush1.bf16.msra.mxu0 %v3333_v29  ;;  %2450 = vmatpush1.bf16.msra.mxu1 %v3444_v21 }
 0x1cc   :  { %2420 = vmatprep.subr.bf16.mxu0 %v3336_v34  ;;  %2452 = vmatprep.subr.bf16.mxu1 %v3447_v50 }
 0x1cf   :  { %2422 = vmatpush1.bf16.msra.mxu0 %v3339_v41  ;;  %2454 = vmatpush1.bf16.msra.mxu1 %v3452_v58 }
 0x1d0   :  { %2456 = vmatprep.subr.bf16.mxu0 %v3295_v9  ;;  %2488 = vmatprep.subr.bf16.mxu1 %v3388_v54 }
 0x285   :  { %v798_v42 = vpop.f32.mrb[2].mxu0  ;;  %v869_v63 = vpop.f32.mrb[18].mxu1 }
 0x286   :  { %v874_v3 = vadd.f32 %v798_v42, %v3488_v24  ;;  %v800_v36 = vpop.f32.mrb[3].mxu0  ;;  %v871_v18 = vpop.f32.mrb[19].mxu1  ;;  %v2841_v53 = vadd.f32 %v869_v63, %v3518_v51 }
 0x287   :  { %v875_v19 = vadd.f32 %v800_v36, %v3490_v28  ;;  %v2842_v5 = vadd.f32 %v871_v18, %v3520_v60 }
 0x288   :  { %v2178_v45 = vmul.f32 -1.442695, %v874_v3  ;;  %v2180_v59 = vmul.f32 -1.442695, %v2841_v53 }
 0x289   :  { %v2179_v47 = vmul.f32 -1.442695, %v875_v19 }
 0x28a   :  { %2900 = vpow2.f32 %v2178_v45 }
 0x28b   :  { %2902 = vpow2.f32 %v2179_v47 }
 0x28c   :  { %2904 = vtanh.f32 %v2842_v5 }
 0x28d   :  { %2906 = vpow2.f32 %v2180_v59 }
 0x294   :  { %v2901_v12 = vpop.eup %2900 }
 0x295   :  { %v887_v16 = vadd.f32 1.0, %v2901_v12  ;;  %v2903_v38 = vpop.eup %2902 }
 0x296   :  { %v888_v24 = vadd.f32 1.0, %v2903_v38  ;;  %v2905_v42 = vpop.eup %2904 }
 0x297   :  { %2908 = vrcp.f32 %v887_v16  ;;  %v2907_v30 = vpop.eup %2906 }
 0x298   :  { %2910 = vrcp.f32 %v888_v24  ;;  %v889_v19 = vadd.f32 1.0, %v2907_v30 }
 0x29a   :  { %2912 = vrcp.f32 %v889_v19 }
 0x2a1   :  { %v2909_v28 = vpop.eup %2908 }
 0x2a2   :  { %v898_v3 = vmul.f32 %v2909_v28, %v2905_v42  ;;  %v2911_v36 = vpop.eup %2910 }
 0x2a3   :  { %v897_v45 = vmul.f32 %v2911_v36, %v3524_v31 }
 0x2a4   :  { %v2913_v18 = vpop.eup %2912 }
 0x2a5   :  { %v3570_v63 = vadd.f32 %v898_v3, %v897_v45 }
 0x2a7   :  { %2914 = vtanh.f32 %v3570_v63 }
 0x2b1   :  { %v2915_v47 = vpop.eup %2914 }
 0x2b2   :  { %v3573_v53 = vmul.f32 %v2915_v47, %v2913_v18 }
 0x2b4   :  { %974 = vmatmul.mubr.f32.vlgmr.msra.gmra.mrb[4].mxu0 %v3573_v53  ;;  %1045 = vmatmul.mubr.f32.vlgmr.msra.gmra.mrb[20].mxu1 %v3573_v53 }
 0x2b5   :  { %2458 = vmatpush1.bf16.msra.mxu0 %v3297_v13  ;;  %2490 = vmatpush1.bf16.msra.mxu1 %v3394_v61 }
 0x2b6   :  { %2460 = vmatprep.subr.bf16.mxu0 %v3301_v22  ;;  %2492 = vmatprep.subr.bf16.mxu1 %v3397_v62 }
 0x2b7   :  { %1150 = vmatprep.mubr.f32.mxu0 %v3884_v0  ;;  %1221 = vmatprep.mubr.f32.mxu1 %v3884_v0 }
 0x2b9   :  { %2462 = vmatpush1.bf16.msra.mxu0 %v3303_v26  ;;  %2494 = vmatpush1.bf16.msra.mxu1 %v3404_v7 }
 0x2ba   :  { %2464 = vmatprep.subr.bf16.mxu0 %v3306_v35  ;;  %2496 = vmatprep.subr.bf16.mxu1 %v3407_v8 }
 0x2bd   :  { %2466 = vmatpush1.bf16.msra.mxu0 %v3309_v39  ;;  %2498 = vmatpush1.bf16.msra.mxu1 %v3412_v48 }
 0x2be   :  { %2468 = vmatprep.subr.bf16.mxu0 %v3312_v44  ;;  %2500 = vmatprep.subr.bf16.mxu1 %v3415_v17 }
 0x2c1   :  { %2470 = vmatpush1.bf16.msra.mxu0 %v3315_v52  ;;  %2502 = vmatpush1.bf16.msra.mxu1 %v3420_v56 }
 0x2c2   :  { %2472 = vmatprep.subr.bf16.mxu0 %v3318_v57  ;;  %2504 = vmatprep.subr.bf16.mxu1 %v3423_v25 }
 0x2c5   :  { %2474 = vmatpush1.bf16.msra.mxu0 %v3321_v1  ;;  %2506 = vmatpush1.bf16.msra.mxu1 %v3428_v2 }
 0x2c6   :  { %2476 = vmatprep.subr.bf16.mxu0 %v3324_v6  ;;  %2508 = vmatprep.subr.bf16.mxu1 %v3431_v33 }
 0x2c9   :  { %2478 = vmatpush1.bf16.msra.mxu0 %v3327_v15  ;;  %2510 = vmatpush1.bf16.msra.mxu1 %v3436_v11 }
 0x2ca   :  { %2480 = vmatprep.subr.bf16.mxu0 %v3330_v20  ;;  %2512 = vmatprep.subr.bf16.mxu1 %v3439_v43 }
 0x2cd   :  { %2482 = vmatpush1.bf16.msra.mxu0 %v3333_v29  ;;  %2514 = vmatpush1.bf16.msra.mxu1 %v3444_v21 }
 0x2ce   :  { %2484 = vmatprep.subr.bf16.mxu0 %v3336_v34  ;;  %2516 = vmatprep.subr.bf16.mxu1 %v3447_v50 }
 0x2d1   :  { %2486 = vmatpush1.bf16.msra.mxu0 %v3339_v41  ;;  %2518 = vmatpush1.bf16.msra.mxu1 %v3452_v58 }
 0x2d2   :  { %2520 = vmatprep.subr.bf16.mxu0 %v3295_v9  ;;  %2552 = vmatprep.subr.bf16.mxu1 %v3388_v54 }
 0x387   :  { %v975_v30 = vpop.f32.mrb[4].mxu0  ;;  %v1046_v38 = vpop.f32.mrb[20].mxu1 }
 0x388   :  { %v1051_v31 = vadd.f32 %v975_v30, %v3492_v32  ;;  %v977_v5 = vpop.f32.mrb[5].mxu0  ;;  %v1048_v59 = vpop.f32.mrb[21].mxu1  ;;  %v2843_v42 = vadd.f32 %v1046_v38, %v3518_v51 }
 0x389   :  { %v1052_v12 = vadd.f32 %v977_v5, %v3494_v37  ;;  %v2844_v28 = vadd.f32 %v1048_v59, %v3520_v60 }
 0x38a   :  { %v2181_v16 = vmul.f32 -1.442695, %v1051_v31  ;;  %v2183_v3 = vmul.f32 -1.442695, %v2843_v42 }
 0x38b   :  { %v2182_v24 = vmul.f32 -1.442695, %v1052_v12 }
 0x38c   :  { %2916 = vpow2.f32 %v2181_v16 }
 0x38d   :  { %2918 = vpow2.f32 %v2182_v24 }
 0x38e   :  { %2920 = vtanh.f32 %v2844_v28 }
 0x38f   :  { %2922 = vpow2.f32 %v2183_v3 }
 0x396   :  { %v2917_v36 = vpop.eup %2916 }
 0x397   :  { %v1064_v19 = vadd.f32 1.0, %v2917_v36  ;;  %v2919_v45 = vpop.eup %2918 }
 0x398   :  { %v1065_v32 = vadd.f32 1.0, %v2919_v45  ;;  %v2921_v18 = vpop.eup %2920 }
 0x399   :  { %2924 = vrcp.f32 %v1064_v19  ;;  %v2923_v47 = vpop.eup %2922 }
 0x39a   :  { %2926 = vrcp.f32 %v1065_v32  ;;  %v1066_v5 = vadd.f32 1.0, %v2923_v47 }
 0x39c   :  { %2928 = vrcp.f32 %v1066_v5 }
 0x3a3   :  { %v2925_v37 = vpop.eup %2924 }
 0x3a4   :  { %v1075_v30 = vmul.f32 %v2925_v37, %v2921_v18  ;;  %v2927_v31 = vpop.eup %2926 }
 0x3a5   :  { %v1074_v12 = vmul.f32 %v2927_v31, %v3570_v63 }
 0x3a6   :  { %v2929_v59 = vpop.eup %2928 }
 0x3a7   :  { %v3616_v38 = vadd.f32 %v1075_v30, %v1074_v12 }
 0x3a9   :  { %2930 = vtanh.f32 %v3616_v38 }
 0x3b3   :  { %v2931_v16 = vpop.eup %2930 }
 0x3b4   :  { %v3619_v24 = vmul.f32 %v2931_v16, %v2929_v59 }
 0x3b6   :  { %1151 = vmatmul.mubr.f32.vlgmr.msra.gmra.mrb[6].mxu0 %v3619_v24  ;;  %1222 = vmatmul.mubr.f32.vlgmr.msra.gmra.mrb[22].mxu1 %v3619_v24 }
 0x3b7   :  { %2522 = vmatpush1.bf16.msra.mxu0 %v3297_v13  ;;  %2554 = vmatpush1.bf16.msra.mxu1 %v3394_v61 }
 0x3b8   :  { %2524 = vmatprep.subr.bf16.mxu0 %v3301_v22  ;;  %2556 = vmatprep.subr.bf16.mxu1 %v3397_v62 }
 0x3b9   :  { %1327 = vmatprep.mubr.f32.mxu0 %v3884_v0  ;;  %1398 = vmatprep.mubr.f32.mxu1 %v3884_v0 }
 0x3bb   :  { %2526 = vmatpush1.bf16.msra.mxu0 %v3303_v26  ;;  %2558 = vmatpush1.bf16.msra.mxu1 %v3404_v7 }
 0x3bc   :  { %2528 = vmatprep.subr.bf16.mxu0 %v3306_v35  ;;  %2560 = vmatprep.subr.bf16.mxu1 %v3407_v8 }
 0x3bf   :  { %2530 = vmatpush1.bf16.msra.mxu0 %v3309_v39  ;;  %2562 = vmatpush1.bf16.msra.mxu1 %v3412_v48 }
 0x3c0   :  { %2532 = vmatprep.subr.bf16.mxu0 %v3312_v44  ;;  %2564 = vmatprep.subr.bf16.mxu1 %v3415_v17 }
 0x3c3   :  { %2534 = vmatpush1.bf16.msra.mxu0 %v3315_v52  ;;  %2566 = vmatpush1.bf16.msra.mxu1 %v3420_v56 }
 0x3c4   :  { %2536 = vmatprep.subr.bf16.mxu0 %v3318_v57  ;;  %2568 = vmatprep.subr.bf16.mxu1 %v3423_v25 }
 0x3c7   :  { %2538 = vmatpush1.bf16.msra.mxu0 %v3321_v1  ;;  %2570 = vmatpush1.bf16.msra.mxu1 %v3428_v2 }
 0x3c8   :  { %2540 = vmatprep.subr.bf16.mxu0 %v3324_v6  ;;  %2572 = vmatprep.subr.bf16.mxu1 %v3431_v33 }
 0x3cb   :  { %2542 = vmatpush1.bf16.msra.mxu0 %v3327_v15  ;;  %2574 = vmatpush1.bf16.msra.mxu1 %v3436_v11 }
 0x3cc   :  { %2544 = vmatprep.subr.bf16.mxu0 %v3330_v20  ;;  %2576 = vmatprep.subr.bf16.mxu1 %v3439_v43 }
 0x3cf   :  { %2546 = vmatpush1.bf16.msra.mxu0 %v3333_v29  ;;  %2578 = vmatpush1.bf16.msra.mxu1 %v3444_v21 }
 0x3d0   :  { %2548 = vmatprep.subr.bf16.mxu0 %v3336_v34  ;;  %2580 = vmatprep.subr.bf16.mxu1 %v3447_v50 }
 0x3d3   :  { %2550 = vmatpush1.bf16.msra.mxu0 %v3339_v41  ;;  %2582 = vmatpush1.bf16.msra.mxu1 %v3452_v58 }
 0x3d4   :  { %2584 = vmatprep.subr.bf16.mxu0 %v3295_v9  ;;  %2616 = vmatprep.subr.bf16.mxu1 %v3388_v54 }
 0x489   :  { %v1152_v63 = vpop.f32.mrb[6].mxu0  ;;  %v1223_v42 = vpop.f32.mrb[22].mxu1 }
 0x48a   :  { %v1228_v28 = vadd.f32 %v1152_v63, %v3496_v40  ;;  %v1154_v3 = vpop.f32.mrb[7].mxu0  ;;  %v1225_v36 = vpop.f32.mrb[23].mxu1  ;;  %v2845_v18 = vadd.f32 %v1223_v42, %v3518_v51 }
 0x48b   :  { %v1229_v19 = vadd.f32 %v1154_v3, %v3498_v46  ;;  %v2846_v47 = vadd.f32 %v1225_v36, %v3520_v60 }
 0x48c   :  { %v2184_v45 = vmul.f32 -1.442695, %v1228_v28  ;;  %v2186_v37 = vmul.f32 -1.442695, %v2845_v18 }
 0x48d   :  { %v2185_v32 = vmul.f32 -1.442695, %v1229_v19 }
 0x48e   :  { %2932 = vpow2.f32 %v2184_v45 }
 0x48f   :  { %2934 = vpow2.f32 %v2185_v32 }
 0x490   :  { %2936 = vtanh.f32 %v2846_v47 }
 0x491   :  { %2938 = vpow2.f32 %v2186_v37 }
 0x498   :  { %v2933_v30 = vpop.eup %2932 }
 0x499   :  { %v1241_v31 = vadd.f32 1.0, %v2933_v30  ;;  %v2935_v5 = vpop.eup %2934 }
 0x49a   :  { %v1242_v40 = vadd.f32 1.0, %v2935_v5  ;;  %v2937_v12 = vpop.eup %2936 }
 0x49b   :  { %2940 = vrcp.f32 %v1241_v31  ;;  %v2939_v59 = vpop.eup %2938 }
 0x49c   :  { %2942 = vrcp.f32 %v1242_v40  ;;  %v1243_v28 = vadd.f32 1.0, %v2939_v59 }
 0x49e   :  { %2944 = vrcp.f32 %v1243_v28 }
 0x4a5   :  { %v2941_v46 = vpop.eup %2940 }
 0x4a6   :  { %v1252_v16 = vmul.f32 %v2941_v46, %v2937_v12  ;;  %v2943_v63 = vpop.eup %2942 }
 0x4a7   :  { %v1251_v3 = vmul.f32 %v2943_v63, %v3616_v38 }
 0x4a8   :  { %v2945_v36 = vpop.eup %2944 }
 0x4a9   :  { %v3662_v42 = vadd.f32 %v1252_v16, %v1251_v3 }
 0x4ab   :  { %2946 = vtanh.f32 %v3662_v42 }
 0x4b5   :  { %v2947_v19 = vpop.eup %2946 }
 0x4b6   :  { %v3665_v45 = vmul.f32 %v2947_v19, %v2945_v36 }
 0x4b8   :  { %1328 = vmatmul.mubr.f32.vlgmr.msra.gmra.mrb[8].mxu0 %v3665_v45  ;;  %1399 = vmatmul.mubr.f32.vlgmr.msra.gmra.mrb[24].mxu1 %v3665_v45 }
 0x4b9   :  { %2586 = vmatpush1.bf16.msra.mxu0 %v3297_v13  ;;  %2618 = vmatpush1.bf16.msra.mxu1 %v3394_v61 }
 0x4ba   :  { %2588 = vmatprep.subr.bf16.mxu0 %v3301_v22  ;;  %2620 = vmatprep.subr.bf16.mxu1 %v3397_v62 }
 0x4bb   :  { %1504 = vmatprep.mubr.f32.mxu0 %v3884_v0  ;;  %1575 = vmatprep.mubr.f32.mxu1 %v3884_v0 }
 0x4bd   :  { %2590 = vmatpush1.bf16.msra.mxu0 %v3303_v26  ;;  %2622 = vmatpush1.bf16.msra.mxu1 %v3404_v7 }
 0x4be   :  { %2592 = vmatprep.subr.bf16.mxu0 %v3306_v35  ;;  %2624 = vmatprep.subr.bf16.mxu1 %v3407_v8 }
 0x4c1   :  { %2594 = vmatpush1.bf16.msra.mxu0 %v3309_v39  ;;  %2626 = vmatpush1.bf16.msra.mxu1 %v3412_v48 }
 0x4c2   :  { %2596 = vmatprep.subr.bf16.mxu0 %v3312_v44  ;;  %2628 = vmatprep.subr.bf16.mxu1 %v3415_v17 }
 0x4c5   :  { %2598 = vmatpush1.bf16.msra.mxu0 %v3315_v52  ;;  %2630 = vmatpush1.bf16.msra.mxu1 %v3420_v56 }
 0x4c6   :  { %2600 = vmatprep.subr.bf16.mxu0 %v3318_v57  ;;  %2632 = vmatprep.subr.bf16.mxu1 %v3423_v25 }
 0x4c9   :  { %2602 = vmatpush1.bf16.msra.mxu0 %v3321_v1  ;;  %2634 = vmatpush1.bf16.msra.mxu1 %v3428_v2 }
 0x4ca   :  { %2604 = vmatprep.subr.bf16.mxu0 %v3324_v6  ;;  %2636 = vmatprep.subr.bf16.mxu1 %v3431_v33 }
 0x4cd   :  { %2606 = vmatpush1.bf16.msra.mxu0 %v3327_v15  ;;  %2638 = vmatpush1.bf16.msra.mxu1 %v3436_v11 }
 0x4ce   :  { %2608 = vmatprep.subr.bf16.mxu0 %v3330_v20  ;;  %2640 = vmatprep.subr.bf16.mxu1 %v3439_v43 }
 0x4d1   :  { %2610 = vmatpush1.bf16.msra.mxu0 %v3333_v29  ;;  %2642 = vmatpush1.bf16.msra.mxu1 %v3444_v21 }
 0x4d2   :  { %2612 = vmatprep.subr.bf16.mxu0 %v3336_v34  ;;  %2644 = vmatprep.subr.bf16.mxu1 %v3447_v50 }
 0x4d5   :  { %2614 = vmatpush1.bf16.msra.mxu0 %v3339_v41  ;;  %2646 = vmatpush1.bf16.msra.mxu1 %v3452_v58 }
 0x4d6   :  { %2648 = vmatprep.subr.bf16.mxu0 %v3295_v9  ;;  %2680 = vmatprep.subr.bf16.mxu1 %v3388_v54 }
 0x58b   :  { %v1329_v38 = vpop.f32.mrb[8].mxu0  ;;  %v1400_v32 = vpop.f32.mrb[24].mxu1 }
 0x58c   :  { %v1405_v18 = vadd.f32 %v1329_v38, %v3500_v49  ;;  %v1331_v47 = vpop.f32.mrb[9].mxu0  ;;  %v1402_v37 = vpop.f32.mrb[25].mxu1  ;;  %v2847_v40 = vadd.f32 %v1400_v32, %v3518_v51 }
 0x58d   :  { %v1406_v30 = vadd.f32 %v1331_v47, %v3502_v55  ;;  %v2848_v12 = vadd.f32 %v1402_v37, %v3520_v60 }
 0x58e   :  { %v2187_v31 = vmul.f32 -1.442695, %v1405_v18  ;;  %v2189_v59 = vmul.f32 -1.442695, %v2847_v40 }
 0x58f   :  { %v2188_v5 = vmul.f32 -1.442695, %v1406_v30 }
 0x590   :  { %2948 = vpow2.f32 %v2187_v31 }
 0x591   :  { %2950 = vpow2.f32 %v2188_v5 }
 0x592   :  { %2952 = vtanh.f32 %v2848_v12 }
 0x593   :  { %2954 = vpow2.f32 %v2189_v59 }
 0x59a   :  { %v2949_v46 = vpop.eup %2948 }
 0x59b   :  { %v1418_v16 = vadd.f32 1.0, %v2949_v46  ;;  %v2951_v63 = vpop.eup %2950 }
 0x59c   :  { %v1419_v49 = vadd.f32 1.0, %v2951_v63  ;;  %v2953_v28 = vpop.eup %2952 }
 0x59d   :  { %2956 = vrcp.f32 %v1418_v16  ;;  %v2955_v3 = vpop.eup %2954 }
 0x59e   :  { %2958 = vrcp.f32 %v1419_v49  ;;  %v1420_v38 = vadd.f32 1.0, %v2955_v3 }
 0x5a0   :  { %2960 = vrcp.f32 %v1420_v38 }
 0x5a7   :  { %v2957_v55 = vpop.eup %2956 }
 0x5a8   :  { %v1429_v36 = vmul.f32 %v2957_v55, %v2953_v28  ;;  %v2959_v19 = vpop.eup %2958 }
 0x5a9   :  { %v1428_v18 = vmul.f32 %v2959_v19, %v3662_v42 }
 0x5aa   :  { %v2961_v47 = vpop.eup %2960 }
 0x5ab   :  { %v3708_v32 = vadd.f32 %v1429_v36, %v1428_v18 }
 0x5ad   :  { %2962 = vtanh.f32 %v3708_v32 }
 0x5b7   :  { %v2963_v37 = vpop.eup %2962 }
 0x5b8   :  { %v3711_v30 = vmul.f32 %v2963_v37, %v2961_v47 }
 0x5ba   :  { %1505 = vmatmul.mubr.f32.vlgmr.msra.gmra.mrb[10].mxu0 %v3711_v30  ;;  %1576 = vmatmul.mubr.f32.vlgmr.msra.gmra.mrb[26].mxu1 %v3711_v30 }
 0x5bb   :  { %2650 = vmatpush1.bf16.msra.mxu0 %v3297_v13  ;;  %2682 = vmatpush1.bf16.msra.mxu1 %v3394_v61 }
 0x5bc   :  { %2652 = vmatprep.subr.bf16.mxu0 %v3301_v22  ;;  %2684 = vmatprep.subr.bf16.mxu1 %v3397_v62 }
 0x5bd   :  { %1681 = vmatprep.mubr.f32.mxu0 %v3884_v0  ;;  %1752 = vmatprep.mubr.f32.mxu1 %v3884_v0 }
 0x5bf   :  { %2654 = vmatpush1.bf16.msra.mxu0 %v3303_v26  ;;  %2686 = vmatpush1.bf16.msra.mxu1 %v3404_v7 }
 0x5c0   :  { %2656 = vmatprep.subr.bf16.mxu0 %v3306_v35  ;;  %2688 = vmatprep.subr.bf16.mxu1 %v3407_v8 }
 0x5c3   :  { %2658 = vmatpush1.bf16.msra.mxu0 %v3309_v39  ;;  %2690 = vmatpush1.bf16.msra.mxu1 %v3412_v48 }
 0x5c4   :  { %2660 = vmatprep.subr.bf16.mxu0 %v3312_v44  ;;  %2692 = vmatprep.subr.bf16.mxu1 %v3415_v17 }
 0x5c7   :  { %2662 = vmatpush1.bf16.msra.mxu0 %v3315_v52  ;;  %2694 = vmatpush1.bf16.msra.mxu1 %v3420_v56 }
 0x5c8   :  { %2664 = vmatprep.subr.bf16.mxu0 %v3318_v57  ;;  %2696 = vmatprep.subr.bf16.mxu1 %v3423_v25 }
 0x5cb   :  { %2666 = vmatpush1.bf16.msra.mxu0 %v3321_v1  ;;  %2698 = vmatpush1.bf16.msra.mxu1 %v3428_v2 }
 0x5cc   :  { %2668 = vmatprep.subr.bf16.mxu0 %v3324_v6  ;;  %2700 = vmatprep.subr.bf16.mxu1 %v3431_v33 }
 0x5cf   :  { %2670 = vmatpush1.bf16.msra.mxu0 %v3327_v15  ;;  %2702 = vmatpush1.bf16.msra.mxu1 %v3436_v11 }
 0x5d0   :  { %2672 = vmatprep.subr.bf16.mxu0 %v3330_v20  ;;  %2704 = vmatprep.subr.bf16.mxu1 %v3439_v43 }
 0x5d3   :  { %2674 = vmatpush1.bf16.msra.mxu0 %v3333_v29  ;;  %2706 = vmatpush1.bf16.msra.mxu1 %v3444_v21 }
 0x5d4   :  { %2676 = vmatprep.subr.bf16.mxu0 %v3336_v34  ;;  %2708 = vmatprep.subr.bf16.mxu1 %v3447_v50 }
 0x5d7   :  { %2678 = vmatpush1.bf16.msra.mxu0 %v3339_v41  ;;  %2710 = vmatpush1.bf16.msra.mxu1 %v3452_v58 }
 0x5d8   :  { %2712 = vmatprep.subr.bf16.mxu0 %v3295_v9  ;;  %2744 = vmatprep.subr.bf16.mxu1 %v3388_v54 }
 0x68d   :  { %v1506_v42 = vpop.f32.mrb[10].mxu0  ;;  %v1577_v31 = vpop.f32.mrb[26].mxu1 }
 0x68e   :  { %v1582_v5 = vadd.f32 %v1506_v42, %v3504_v4  ;;  %v1508_v40 = vpop.f32.mrb[11].mxu0  ;;  %v1579_v12 = vpop.f32.mrb[27].mxu1  ;;  %v2849_v63 = vadd.f32 %v1577_v31, %v3518_v51 }
 0x68f   :  { %v1583_v59 = vadd.f32 %v1508_v40, %v3506_v10  ;;  %v2850_v49 = vadd.f32 %v1579_v12, %v3520_v60 }
 0x690   :  { %v2190_v46 = vmul.f32 -1.442695, %v1582_v5  ;;  %v2192_v28 = vmul.f32 -1.442695, %v2849_v63  ;;  %v241_v63 = vld [vmem:[#allocation14 + $0x58] sm:$0xff] }
 0x691   :  { %v2191_v16 = vmul.f32 -1.442695, %v1583_v59  ;;  %v234_v59 = vld [vmem:[#allocation14 + $0x20] sm:$0xff] }
 0x692   :  { %2964 = vpow2.f32 %v2190_v46  ;;  %v236_v46 = vld [vmem:[#allocation14 + $0x30] sm:$0xff] }
 0x693   :  { %2966 = vpow2.f32 %v2191_v16  ;;  %v239_v16 = vld [vmem:[#allocation14 + $0x48] sm:$0xff] }
 0x694   :  { %2968 = vtanh.f32 %v2850_v49  ;;  %v2781_v49 = vpack.c.bf16 %v236_v46, %v234_v59 }
 0x695   :  { %2970 = vpow2.f32 %v2192_v28  ;;  %v2783_v28 = vpack.c.bf16 %v241_v63, %v239_v16 }
 0x69c   :  { %v2965_v9 = vpop.eup %2964 }
 0x69d   :  { %v1595_v3 = vadd.f32 1.0, %v2965_v9  ;;  %v2967_v54 = vpop.eup %2966  ;;  %v238_v9 = vld [vmem:[#allocation14 + $0x40] sm:$0xff] }
 0x69e   :  { %v1596_v4 = vadd.f32 1.0, %v2967_v54  ;;  %v2969_v55 = vpop.eup %2968  ;;  %v243_v54 = vld [vmem:[#allocation14 + $0x68] sm:$0xff] }
 0x69f   :  { %2972 = vrcp.f32 %v1595_v3  ;;  %v2971_v36 = vpop.eup %2970  ;;  %v240_v3 = vld [vmem:[#allocation14 + $0x50] sm:$0xff] }
 0x6a0   :  { %2974 = vrcp.f32 %v1596_v4  ;;  %v1597_v18 = vadd.f32 1.0, %v2971_v36  ;;  %v245_v4 = vld [vmem:[#allocation14 + $0x78] sm:$0xff] }
 0x6a1   :  { %v2787_v36 = vpack.c.bf16 %v245_v4, %v243_v54 }
 0x6a2   :  { %2976 = vrcp.f32 %v1597_v18  ;;  %v249_v18 = vld [vmem:[#allocation14 + $0x98] sm:$0xff] }
 0x6a9   :  { %v2973_v10 = vpop.eup %2972 }
 0x6aa   :  { %v1606_v19 = vmul.f32 %v2973_v10, %v2969_v55  ;;  %v2975_v38 = vpop.eup %2974  ;;  %v2785_v55 = vpack.c.bf16 %v240_v3, %v238_v9  ;;  %v242_v10 = vld [vmem:[#allocation14 + $0x60] sm:$0xff] }
 0x6ab   :  { %v1605_v47 = vmul.f32 %v2975_v38, %v3708_v32  ;;  %v247_v38 = vld [vmem:[#allocation14 + $0x88] sm:$0xff] }
 0x6ac   :  { %v2977_v42 = vpop.eup %2976 }
 0x6ad   :  { %v3754_v37 = vadd.f32 %v1606_v19, %v1605_v47  ;;  %v244_v19 = vld [vmem:[#allocation14 + $0x70] sm:$0xff] }
 0x6ae   :  { %v2789_v47 = vpack.c.bf16 %v244_v19, %v242_v10 }
 0x6af   :  { %2978 = vtanh.f32 %v3754_v37 }
 0x6b9   :  { %v2979_v31 = vpop.eup %2978 }
 0x6ba   :  { %v3757_v5 = vmul.f32 %v2979_v31, %v2977_v42  ;;  %v246_v42 = vld [vmem:[#allocation14 + $0x80] sm:$0xff]  ;;  %v248_v31 = vld [vmem:[#allocation14 + $0x90] sm:$0xff] }
 0x6bc   :  { %1682 = vmatmul.mubr.f32.vlgmr.msra.gmra.mrb[12].mxu0 %v3757_v5  ;;  %1753 = vmatmul.mubr.f32.vlgmr.msra.gmra.mrb[28].mxu1 %v3757_v5 }
 0x6bd   :  { %2714 = vmatpush1.bf16.msra.mxu0 %v3297_v13  ;;  %2746 = vmatpush1.bf16.msra.mxu1 %v3394_v61  ;;  %v231_v13 = vld [vmem:[#allocation14 + $0x8] sm:$0xff] }
 0x6be   :  { %2716 = vmatprep.subr.bf16.mxu0 %v3301_v22  ;;  %2748 = vmatprep.subr.bf16.mxu1 %v3397_v62  ;;  %v233_v22 = vld [vmem:[#allocation14 + $0x18] sm:$0xff] }
 0x6bf   :  { %1858 = vmatprep.mubr.f32.mxu0 %v3884_v0  ;;  %1929 = vmatprep.mubr.f32.mxu1 %v3884_v0 }
 0x6c1   :  { %2718 = vmatpush1.bf16.msra.mxu0 %v3303_v26  ;;  %2750 = vmatpush1.bf16.msra.mxu1 %v3404_v7  ;;  %v2775_v26 = vpack.c.bf16 %v233_v22, %v231_v13  ;;  %v251_v13 = vld [vmem:[#allocation14 + $0xa8] sm:$0xff]  ;;  %v253_v22 = vld [vmem:[#allocation14 + $0xb8] sm:$0xff] }
 0x6c2   :  { %2720 = vmatprep.subr.bf16.mxu0 %v3306_v35  ;;  %2752 = vmatprep.subr.bf16.mxu1 %v3407_v8 }
 0x6c5   :  { %2722 = vmatpush1.bf16.msra.mxu0 %v3309_v39  ;;  %2754 = vmatpush1.bf16.msra.mxu1 %v3412_v48 }
 0x6c6   :  { %2724 = vmatprep.subr.bf16.mxu0 %v3312_v44  ;;  %2756 = vmatprep.subr.bf16.mxu1 %v3415_v17 }
 0x6c9   :  { %2726 = vmatpush1.bf16.msra.mxu0 %v3315_v52  ;;  %2758 = vmatpush1.bf16.msra.mxu1 %v3420_v56 }
 0x6ca   :  { %2728 = vmatprep.subr.bf16.mxu0 %v3318_v57  ;;  %2760 = vmatprep.subr.bf16.mxu1 %v3423_v25 }
 0x6cd   :  { %2730 = vmatpush1.bf16.msra.mxu0 %v3321_v1  ;;  %2762 = vmatpush1.bf16.msra.mxu1 %v3428_v2 }
 0x6ce   :  { %2732 = vmatprep.subr.bf16.mxu0 %v3324_v6  ;;  %2764 = vmatprep.subr.bf16.mxu1 %v3431_v33 }
 0x6d1   :  { %2734 = vmatpush1.bf16.msra.mxu0 %v3327_v15  ;;  %2766 = vmatpush1.bf16.msra.mxu1 %v3436_v11 }
 0x6d2   :  { %2736 = vmatprep.subr.bf16.mxu0 %v3330_v20  ;;  %2768 = vmatprep.subr.bf16.mxu1 %v3439_v43  ;;  %v230_v43 = vld [vmem:[#allocation14] sm:$0xff] }
 0x6d5   :  { %2738 = vmatpush1.bf16.msra.mxu0 %v3333_v29  ;;  %2770 = vmatpush1.bf16.msra.mxu1 %v3444_v21  ;;  %v232_v21 = vld [vmem:[#allocation14 + $0x10] sm:$0xff] }
 0x6d6   :  { %2740 = vmatprep.subr.bf16.mxu0 %v3336_v34  ;;  %2772 = vmatprep.subr.bf16.mxu1 %v3447_v50  ;;  %v235_v50 = vld [vmem:[#allocation14 + $0x28] sm:$0xff]  ;;  %v2777_v32 = vpack.c.bf16 %v232_v21, %v230_v43 }
 0x6d9   :  { %2742 = vmatpush1.bf16.msra.mxu0 %v3339_v41  ;;  %2774 = vmatpush1.bf16.msra.mxu1 %v3452_v58  ;;  %v237_v58 = vld [vmem:[#allocation14 + $0x38] sm:$0xff] }
 0x6da   :  { %2776 = vmatprep.subr.bf16.mxu0 %v2775_v26  ;;  %v2779_v12 = vpack.c.bf16 %v237_v58, %v235_v50  ;;  %v2793_v26 = vpack.c.bf16 %v248_v31, %v246_v42 }
 0x78f   :  { %v1683_v35 = vpop.f32.mrb[12].mxu0  ;;  %v1754_v39 = vpop.f32.mrb[28].mxu1 }
 0x790   :  { %v1759_v44 = vadd.f32 %v1683_v35, %v3508_v14  ;;  %v1685_v52 = vpop.f32.mrb[13].mxu0  ;;  %v1756_v57 = vpop.f32.mrb[29].mxu1  ;;  %v2851_v20 = vadd.f32 %v1754_v39, %v3518_v51  ;;  %v2795_v35 = vpack.c.bf16 %v253_v22, %v251_v13  ;;  %v250_v39 = vld [vmem:[#allocation14 + $0xa0] sm:$0xff] }
 0x791   :  { %v1760_v1 = vadd.f32 %v1685_v52, %v3510_v23  ;;  %v2852_v29 = vadd.f32 %v1756_v57, %v3520_v60  ;;  %v255_v52 = vld [vmem:[#allocation14 + $0xc8] sm:$0xff]  ;;  %v257_v57 = vld [vmem:[#allocation14 + $0xd8] sm:$0xff] }
 0x792   :  { %v2193_v6 = vmul.f32 -1.442695, %v1759_v44  ;;  %v2195_v34 = vmul.f32 -1.442695, %v2851_v20  ;;  %v252_v44 = vld [vmem:[#allocation14 + $0xb0] sm:$0xff] }
 0x793   :  { %v2194_v15 = vmul.f32 -1.442695, %v1760_v1  ;;  %v2797_v1 = vpack.c.bf16 %v252_v44, %v250_v39  ;;  %v256_v20 = vld [vmem:[#allocation14 + $0xd0] sm:$0xff] }
 0x794   :  { %2980 = vpow2.f32 %v2193_v6  ;;  %v2799_v6 = vpack.c.bf16 %v257_v57, %v255_v52  ;;  %v2100_v57 = vld [vmem:[#allocation9] sm:$0xff] }
 0x795   :  { %2982 = vpow2.f32 %v2194_v15  ;;  %v254_v15 = vld [vmem:[#allocation14 + $0xc0] sm:$0xff] }
 0x796   :  { %2984 = vtanh.f32 %v2852_v29  ;;  %v259_v29 = vld [vmem:[#allocation14 + $0xe8] sm:$0xff] }
 0x797   :  { %2986 = vpow2.f32 %v2195_v34  ;;  %v261_v34 = vld [vmem:[#allocation14 + $0xf8] sm:$0xff] }
 0x79e   :  { %v2981_v41 = vpop.eup %2980 }
 0x79f   :  { %v1772_v61 = vadd.f32 1.0, %v2981_v41  ;;  %v2983_v62 = vpop.eup %2982  ;;  %v2801_v41 = vpack.c.bf16 %v256_v20, %v254_v15 }
 0x7a0   :  { %v1773_v7 = vadd.f32 1.0, %v2983_v62  ;;  %v2985_v8 = vpop.eup %2984  ;;  %v258_v62 = vld [vmem:[#allocation14 + $0xe0] sm:$0xff] }
 0x7a1   :  { %2988 = vrcp.f32 %v1772_v61  ;;  %v2987_v48 = vpop.eup %2986  ;;  %v2803_v61 = vpack.c.bf16 %v261_v34, %v259_v29 }
 0x7a2   :  { %2990 = vrcp.f32 %v1773_v7  ;;  %v1774_v2 = vadd.f32 1.0, %v2987_v48  ;;  %v260_v7 = vld [vmem:[#allocation14 + $0xf0] sm:$0xff] }
 0x7a4   :  { %2992 = vrcp.f32 %v1774_v2 }
 0x7ab   :  { %v2989_v17 = vpop.eup %2988 }
 0x7ac   :  { %v1783_v56 = vmul.f32 %v2989_v17, %v2985_v8  ;;  %v2991_v25 = vpop.eup %2990  ;;  %v2805_v8 = vpack.c.bf16 %v260_v7, %v258_v62  ;;  %v2101_v62 = vld [vmem:[#allocation9 + $0x8] sm:$0xff] }
 0x7ad   :  { %v1782_v33 = vmul.f32 %v2991_v25, %v3754_v37  ;;  %v2791_v37 = vpack.c.bf16 %v249_v18, %v247_v38 }
 0x7ae   :  { %v2993_v14 = vpop.eup %2992 }
 0x7af   :  { %v3798_v11 = vadd.f32 %v1783_v56, %v1782_v33  ;;  %v3886_v56 = vld [vmem:[#allocation22_spill] sm:$0xff] }
 0x7b1   :  { %2994 = vtanh.f32 %v3798_v11 }
 0x7bb   :  { %v2995_v23 = vpop.eup %2994 }
 0x7bc   :  { %v3801_v40 = vmul.f32 %v2995_v23, %v2993_v14 }
 0x7be   :  { %1859 = vmatmul.mubr.f32.vlgmr.msra.gmra.mrb[14].mxu0 %v3801_v40  ;;  %1930 = vmatmul.mubr.f32.vlgmr.msra.gmra.mrb[30].mxu1 %v3801_v40 }
 0x7bf   :  { %2778 = vmatpush1.bf16.msra.mxu0 %v2777_v32  ;;  %2051 = vmatprep.mubr.f32.mxu0 %v3884_v0  ;;  %v262_v32 = vld [vmem:[%s3873_s6] sm:$0x3]  ;;  %s3180_s6 = smov [#allocation15]  }
 0x7c0   :  { %2780 = vmatprep.subr.bf16.mxu0 %v2779_v12  ;;  %s2161_s22 = sshll.u32 %s3180_s6, 4  ;;  %s2162_s22 = int_to_ptr.vmem [resolvable:$true] %s2161_s22 }
 0x7c1   :  { %s3138_s23 = scalar_lea.vmem %s2162_s22, 1024  ;;  %p3143_p13 = scmp.lt.s32.totalorder %s2162_s22, %s2162_s22 }
 0x7c2   :  { %p3139_p12 = scmp.ne.s32.totalorder %s2162_s22, %s3138_s23  ;;  %p3144_p0 = scmp.lt.s32.totalorder %s3138_s23, %s3138_s23 }
 0x7c3   :  { %2782 = vmatpush1.bf16.msra.mxu0 %v2781_v49 }
 0x7c4   :  { %2784 = vmatprep.subr.bf16.mxu0 %v2783_v28  ;;  %p3145_p1 = por %p3144_p0, %p3143_p13 }
 0x7c6   :  { %p3146_p2 = pnand %p3145_p1, %p3139_p12 }
 0x7c7   :  { %2786 = vmatpush1.bf16.msra.mxu0 %v2785_v55 }
 0x7c8   :  { %2788 = vmatprep.subr.bf16.mxu0 %v2787_v36 }
 0x7cb   :  { %2790 = vmatpush1.bf16.msra.mxu0 %v2789_v47 }
 0x7cc   :  { %2792 = vmatprep.subr.bf16.mxu0 %v2791_v37 }
 0x7cf   :  { %2794 = vmatpush1.bf16.msra.mxu0 %v2793_v26 }
 0x7d0   :  { %2796 = vmatprep.subr.bf16.mxu0 %v2795_v35 }
 0x7d3   :  { %2798 = vmatpush1.bf16.msra.mxu0 %v2797_v1 }
 0x7d4   :  { %2800 = vmatprep.subr.bf16.mxu0 %v2799_v6 }
 0x7d7   :  { %2802 = vmatpush1.bf16.msra.mxu0 %v2801_v41 }
 0x7d8   :  { %2804 = vmatprep.subr.bf16.mxu0 %v2803_v61 }
 0x7db   :  { %2806 = vmatpush1.bf16.msra.mxu0 %v2805_v8 }
 0x7de   :  { %2052 = vmatmul.mubr.f32.vlgmr.msra.gmra.mrb[16].mxu0 %v3527_v27 }
 0x7df   :  { %2057 = vmatprep.mubr.f32.mxu0 %v3884_v0 }
 0x7e2   :  { %2058 = vmatmul.mubr.f32.gmra.mrb[18].mxu0 %v3573_v53 }
 0x7e3   :  { %2063 = vmatprep.mubr.f32.mxu0 %v3884_v0 }
 0x7e6   :  { %2064 = vmatmul.mubr.f32.gmra.mrb[20].mxu0 %v3619_v24  ;;  %v3885_v24 = vld [vmem:[#allocation21_spill] sm:$0xff] }
 0x7e7   :  { %2069 = vmatprep.mubr.f32.mxu0 %v3884_v0 }
 0x7ea   :  { %2070 = vmatmul.mubr.f32.gmra.mrb[22].mxu0 %v3665_v45 }
 0x7eb   :  { %2075 = vmatprep.mubr.f32.mxu0 %v3884_v0 }
 0x7ee   :  { %2076 = vmatmul.mubr.f32.gmra.mrb[24].mxu0 %v3711_v30 }
 0x7ef   :  { %2081 = vmatprep.mubr.f32.mxu0 %v3884_v0 }
 0x7f2   :  { %2082 = vmatmul.mubr.f32.gmra.mrb[26].mxu0 %v3757_v5 }
 0x7f3   :  { %2087 = vmatprep.mubr.f32.mxu0 %v3884_v0 }
 0x7f6   :  { %2088 = vmatmul.mubr.f32.gmra.mrb[28].mxu0 %v3801_v40 }
 0x7f7   :  { %2093 = vmatprep.mubr.f32.mxu0 %v3884_v0 }
 0x891   :  { %v1860_v27 = vpop.f32.mrb[14].mxu0  ;;  %v1931_v53 = vpop.f32.mrb[30].mxu1 }
 0x892   :  { %v1936_v48 = vadd.f32 %v1860_v27, %v3885_v24  ;;  %v1862_v17 = vpop.f32.mrb[15].mxu0  ;;  %v1933_v45 = vpop.f32.mrb[31].mxu1  ;;  %v2853_v5 = vadd.f32 %v1931_v53, %v3518_v51 }
 0x893   :  { %v1937_v25 = vadd.f32 %v1862_v17, %v3886_v56  ;;  %v2854_v33 = vadd.f32 %v1933_v45, %v3520_v60  ;;  %v3887_v60 = vld [vmem:[#allocation20_spill] sm:$0xff] }
 0x894   :  { %v2196_v2 = vmul.f32 -1.442695, %v1936_v48  ;;  %v2198_v43 = vmul.f32 -1.442695, %v2853_v5  ;;  %v3888_v46 = vsub.s32 1, %v3887_v60  ;;  %v3889_v44 = vsub.s32 0, %v3887_v60 }
 0x895   :  { %v2197_v30 = vmul.f32 -1.442695, %v1937_v25  ;;  %v2102_v25 = vld [vmem:[#allocation9 + $0x10] sm:$0xff]  ;;  %v2104_v60 = vld [vmem:[#allocation9 + $0x20] sm:$0xff] }
 0x896   :  { %2996 = vpow2.f32 %v2196_v2  ;;  %v3829_v16 = vrot.slane %v262_v32, %v3888_v46  ;;  %v3838_v52 = vrot.slane %v262_v32, %v3889_v44 }
 0x897   :  { %2998 = vpow2.f32 %v2197_v30 }
 0x898   :  { %3000 = vtanh.f32 %v2854_v33 }
 0x899   :  { %3002 = vpow2.f32 %v2198_v43 }
 0x8a0   :  { %v2997_v21 = vpop.eup %2996 }
 0x8a1   :  { %v1949_v50 = vadd.f32 1.0, %v2997_v21  ;;  %v2999_v0 = vpop.eup %2998 }
 0x8a2   :  { %v1950_v58 = vadd.f32 1.0, %v2999_v0  ;;  %v3001_v14 = vpop.eup %3000 }
 0x8a3   :  { %3004 = vrcp.f32 %v1949_v50  ;;  %v3003_v23 = vpop.eup %3002 }
 0x8a4   :  { %3006 = vrcp.f32 %v1950_v58  ;;  %v1951_v59 = vadd.f32 1.0, %v3003_v23 }
 0x8a6   :  { %3008 = vrcp.f32 %v1951_v59 }
 0x8ad   :  { %v3005_v40 = vpop.eup %3004 }
 0x8ae   :  { %v1960_v12 = vmul.f32 %v3005_v40, %v3001_v14  ;;  %v3007_v51 = vpop.eup %3006  ;;  %v2103_v14 = vld [vmem:[#allocation9 + $0x18] sm:$0xff] }
 0x8af   :  { %v1959_v63 = vmul.f32 %v3007_v51, %v3798_v11 }
 0x8b0   :  { %v3009_v37 = vpop.eup %3008 }
 0x8b1   :  { %v2053_v49 = vpop.f32.mrb[16].mxu0  ;;  %v1961_v28 = vadd.f32 %v1960_v12, %v1959_v63 }
 0x8b2   :  { %v2055_v9 = vpop.f32.mrb[17].mxu0  ;;  %v2054_v41 = vadd.f32 %v2053_v49, %v3838_v52 }
 0x8b3   :  { %v2056_v3 = vadd.f32 %v2055_v9, %v3829_v16  ;;  %3010 = vtanh.f32 %v1961_v28  ;;  %v2105_v9 = vld [vmem:[#allocation9 + $0x28] sm:$0xff] }
 0x8b5   :  { %v2108_v54 = vmul.f32 0.5, %v2056_v3  ;;  %v2059_v4 = vpop.f32.mrb[18].mxu0 }
 0x8b6   :  { %v2061_v55 = vpop.f32.mrb[19].mxu0  ;;  %v2060_v45 = vadd.f32 %v2059_v4, %v3838_v52 }
 0x8b7   :  { %v2116_v36 = vmul.f32 1.442695, %v2108_v54  ;;  %v2062_v10 = vadd.f32 %v2061_v55, %v3829_v16 }
 0x8b9   :  { %3012 = vpow2.f32 %v2116_v36  ;;  %v2109_v19 = vmul.f32 0.5, %v2062_v10  ;;  %v2065_v38 = vpop.f32.mrb[20].mxu0  ;;  %v2106_v36 = vld [vmem:[#allocation9 + $0x30] sm:$0xff] }
 0x8ba   :  { %v2067_v18 = vpop.f32.mrb[21].mxu0  ;;  %v2066_v0 = vadd.f32 %v2065_v38, %v3838_v52 }
 0x8bb   :  { %v2118_v47 = vmul.f32 1.442695, %v2109_v19  ;;  %v2068_v11 = vadd.f32 %v2067_v18, %v3829_v16 }
 0x8bd   :  { %3014 = vpow2.f32 %v2118_v47  ;;  %v2110_v42 = vmul.f32 0.5, %v2068_v11  ;;  %v2071_v31 = vpop.f32.mrb[22].mxu0  ;;  %v3011_v13 = vpop.eup %3010 }
 0x8be   :  { %v2073_v22 = vpop.f32.mrb[23].mxu0  ;;  %v1963_v39 = vmul.f32 %v3011_v13, %v3009_v37  ;;  %v2072_v51 = vadd.f32 %v2071_v31, %v3838_v52 }
 0x8bf   :  { %v2120_v26 = vmul.f32 1.442695, %v2110_v42  ;;  %v2074_v35 = vadd.f32 %v2073_v22, %v3829_v16  ;;  %v2107_v22 = vld [vmem:[#allocation9 + $0x38] sm:$0xff] }
 0x8c0   :  { %2094 = vmatmul.mubr.f32.gmra.mrb[30].mxu0 %v1963_v39 }
 0x8c1   :  { %3016 = vpow2.f32 %v2120_v26  ;;  %v2111_v1 = vmul.f32 0.5, %v2074_v35  ;;  %v2077_v6 = vpop.f32.mrb[24].mxu0 }
 0x8c2   :  { %v2079_v15 = vpop.f32.mrb[25].mxu0  ;;  %v2078_v49 = vadd.f32 %v2077_v6, %v3838_v52 }
 0x8c3   :  { %v3013_v20 = vpop.eup %3012  ;;  %v2122_v29 = vmul.f32 1.442695, %v2111_v1  ;;  %v2080_v34 = vadd.f32 %v2079_v15, %v3829_v16 }
 0x8c4   :  { %v2132_v61 = vmul.f32 %v3013_v20, %v2100_v57 }
 0x8c5   :  { %3018 = vpow2.f32 %v2122_v29  ;;  %v2112_v7 = vmul.f32 0.5, %v2080_v34  ;;  %v2083_v8 = vpop.f32.mrb[26].mxu0 }
 0x8c6   :  { %v2140_v27 = vadd.f32 %v2132_v61, %v2054_v41  ;;  %v2085_v53 = vpop.f32.mrb[27].mxu0  ;;  %v2084_v4 = vadd.f32 %v2083_v8, %v3838_v52 }
 0x8c7   :  { %v3015_v24 = vpop.eup %3014  ;;  %v2124_v48 = vmul.f32 1.442695, %v2112_v7  ;;  %v2086_v17 = vadd.f32 %v2085_v53, %v3829_v16 }
 0x8c8   :  { %2148 = vst [vmem:[#allocation15] sm:$0xff] %v2140_v27  ;;  %v2133_v56 = vmul.f32 %v3015_v24, %v2101_v62 }
 0x8c9   :  { %3020 = vpow2.f32 %v2124_v48  ;;  %v2113_v2 = vmul.f32 0.5, %v2086_v17  ;;  %v2089_v30 = vpop.f32.mrb[28].mxu0 }
 0x8ca   :  { %v2141_v5 = vadd.f32 %v2133_v56, %v2060_v45  ;;  %v2091_v33 = vpop.f32.mrb[29].mxu0  ;;  %v2090_v38 = vadd.f32 %v2089_v30, %v3838_v52 }
 0x8cb   :  { %v3017_v43 = vpop.eup %3016  ;;  %v2126_v21 = vmul.f32 1.442695, %v2113_v2  ;;  %v2092_v50 = vadd.f32 %v2091_v33, %v3829_v16 }
 0x8cc   :  { %2149 = vst [vmem:[#allocation15 + $0x8] sm:$0xff] %v2141_v5  ;;  %v2134_v58 = vmul.f32 %v3017_v43, %v2102_v25 }
 0x8cd   :  { %3022 = vpow2.f32 %v2126_v21  ;;  %v2114_v23 = vmul.f32 0.5, %v2092_v50 }
 0x8ce   :  { %v2142_v32 = vadd.f32 %v2134_v58, %v2066_v0 }
 0x8cf   :  { %v3019_v40 = vpop.eup %3018  ;;  %v2128_v12 = vmul.f32 1.442695, %v2114_v23 }
 0x8d0   :  { %2150 = vst [vmem:[#allocation15 + $0x10] sm:$0xff] %v2142_v32  ;;  %v2135_v59 = vmul.f32 %v3019_v40, %v2103_v14 }
 0x8d1   :  { %3024 = vpow2.f32 %v2128_v12 }
 0x8d2   :  { %v2143_v46 = vadd.f32 %v2135_v59, %v2072_v51 }
 0x8d3   :  { %v3021_v63 = vpop.eup %3020 }
 0x8d4   :  { %2151 = vst [vmem:[#allocation15 + $0x18] sm:$0xff] %v2143_v46  ;;  %v2136_v28 = vmul.f32 %v3021_v63, %v2104_v60 }
 0x8d6   :  { %v2144_v3 = vadd.f32 %v2136_v28, %v2078_v49 }
 0x8d7   :  { %v3023_v54 = vpop.eup %3022 }
 0x8d8   :  { %2152 = vst [vmem:[#allocation15 + $0x20] sm:$0xff] %v2144_v3  ;;  %v2137_v55 = vmul.f32 %v3023_v54, %v2105_v9 }
 0x8da   :  { %v2145_v10 = vadd.f32 %v2137_v55, %v2084_v4 }
 0x8db   :  { %v3025_v19 = vpop.eup %3024 }
 0x8dc   :  { %2153 = vst [vmem:[#allocation15 + $0x28] sm:$0xff] %v2145_v10  ;;  %v2138_v18 = vmul.f32 %v3025_v19, %v2106_v36 }
 0x8de   :  { %v2146_v47 = vadd.f32 %v2138_v18, %v2090_v38 }
 0x8e0   :  { %2154 = vst [vmem:[#allocation15 + $0x30] sm:$0xff] %v2146_v47 }
 0x993   :  { %v2095_v11 = vpop.f32.mrb[30].mxu0 }
 0x994   :  { %v2097_v37 = vpop.f32.mrb[31].mxu0  ;;  %v2096_v35 = vadd.f32 %v2095_v11, %v3838_v52 }
 0x995   :  { %v2098_v42 = vadd.f32 %v2097_v37, %v3829_v16 }
 0x997   :  { %v2115_v31 = vmul.f32 0.5, %v2098_v42 }
 0x999   :  { %v2130_v13 = vmul.f32 1.442695, %v2115_v31 }
 0x99b   :  { %3026 = vpow2.f32 %v2130_v13 }
 0x9a5   :  { %v3027_v26 = vpop.eup %3026 }
 0x9a6   :  { %v2139_v39 = vmul.f32 %v3027_v26, %v2107_v22 }
 0x9a8   :  { %v2147_v44 = vadd.f32 %v2139_v39, %v2096_v35 }
 0x9aa   :  { %2155 = vst [vmem:[#allocation15 + $0x38] sm:$0xff] %v2147_v44 }
 0x9ab   :  { %3149 = shalt.err (!%p3146_p2)
}
 0x9ac   :  { %s3150_s1 = scalar_lea.hbm %s3874_s7, 1024 }
 0x9ad   :  { %p3151_p3 = scmp.ne.s32.totalorder %s3874_s7, %s3150_s1  ;;  %p3154_p4 = scmp.lt.u32.totalorder %s3150_s1, %s3874_s7 }
 0x9af   :  { %p3156_p5 = pnand %p3154_p4, %p3151_p3 }
 0x9b1   :  { %3159 = shalt.err (!%p3156_p5)
}
 0x9b2   :  { %2167 = dma.vmem_to_hbm [thread:$0]  %s2162_s22, 1024, %s3874_s7, [#allocation8], %s3169_s11, %s3169_s11, %s3170_s12  }
 0x9b3   :  { %3166 = dma.done.wait [#allocation8], 1024  }
 0x9b4   :  { %3167 = vsyncadd [#allocation8], 4294966272 }
 0x9b5   :  { %2171 = vsyncpa [#allocation7], 1 }
 0x9b6   :  { %2172 = vsyncpa [#allocation10], 1 }
 0x9b7   :  { %2173 = vsyncpa [#allocation13], 1 }
 0x9b8   :  { %2174 = vsyncpa [#allocation8], 1 }

</bundles_post_ra>
